<compile_context>
chip_gen: v7x
topology: tpu7x:2x2x1
jax: 0.10.0
libtpu: 0.0.40
codegen_flags: <defaults>
</compile_context>

<pallas_src>
import jax
import jax.numpy as jnp
from jax.experimental import pallas as pl
from jax.experimental.pallas import tpu as pltpu


# ----------------------------------------------------------------------------
# Fused PAM kernel
# ----------------------------------------------------------------------------
def pam_kernel(x_ref, wqkT_ref, bqk_ref, wv_ref, bv_ref, gamma_ref, o_ref,
               qk_scratch, v_scratch):
    """One grid step = one (TQ, C) tile of query rows of one batch element.

    Grid = (B, q_par, nq_inner); axes 0/1 are "parallel" (megacore), axis 2 is
    "arbitrary".  qk_scratch / v_scratch persist across grid steps on a core
    and are recomputed whenever program_id(2) == 0, i.e. at the start of every
    (batch, parallel-shard) block — correct under any core assignment of the
    parallel axes (do NOT key this on the batch axis alone).

    x_ref     : (1, N, C)   full batch element, f32 (residual + projections)
    wqkT_ref  : (2*C8, C)   [Wq | Wk] transposed, bf16
    bqk_ref   : (2*C8, 1)   [bq ; bk], f32
    wv_ref    : (C, C)      Wv, bf16
    bv_ref    : (1, C)      bv, f32
    gamma_ref : (1,)        SMEM scalar
    o_ref     : (1, TQ, C)
    qk_scratch: VMEM (2*C8, N) f32  — lane-dense [Q ; K] transposed
    v_scratch : VMEM (N, C)    bf16
    """
    tq = o_ref.shape[1]
    c8 = qk_scratch.shape[0] // 2

    # ---- per-(batch, shard) projections: one fused Q/K matmul + V ----------
    @pl.when(pl.program_id(2) == 0)
    def _():
        xb = x_ref[0].astype(jnp.bfloat16)                          # (N, C)
        # [Q ; K]^T : contract the C axes of both operands -> (2*C8, N),
        # N on lanes (lane-dense writes, natural RHS layout for QK^T).
        qk = jax.lax.dot_general(
            wqkT_ref[...], xb,
            dimension_numbers=(((1,), (1,)), ((), ())),
            preferred_element_type=jnp.float32)                     # (2*C8, N)
        qk_scratch[...] = qk + bqk_ref[...]
        v = jnp.dot(xb, wv_ref[...],
                    preferred_element_type=jnp.float32)             # (N, C)
        v_scratch[...] = (v + bv_ref[...]).astype(v_scratch.dtype)

    # ---- this query tile ----------------------------------------------------
    q_tile = pl.program_id(1) * pl.num_programs(2) + pl.program_id(2)
    q_start = pl.multiple_of(q_tile * tq, tq)

    xq = x_ref[0, pl.ds(q_start, tq), :]                            # (TQ, C)
    q_t = qk_scratch[0:c8, pl.ds(q_start, tq)]                      # (C8, TQ)
    k_t = qk_scratch[c8:, :]                                        # (C8, N)

    # energy[i, j] = sum_d Q^T[d, i] * K^T[d, j]  ==  (Q K^T) for this tile
    energy = jax.lax.dot_general(
        q_t, k_t, dimension_numbers=(((0,), (0,)), ((), ())),
        preferred_element_type=jnp.float32)                         # (TQ, N)

    # softmax over keys, deferred normalisation (scale the small (TQ, C)
    # output instead of dividing the (TQ, N) tile; reciprocal -> EUP slot).
    m = jnp.max(energy, axis=-1, keepdims=True)
    p = jnp.exp(energy - m)                                         # f32
    l = jnp.sum(p, axis=-1, keepdims=True)                          # (TQ, 1)

    out = jnp.dot(p.astype(v_scratch.dtype), v_scratch[...],
                  preferred_element_type=jnp.float32)               # (TQ, C)
    out = out * pl.reciprocal(l, approx=True)

    gamma = gamma_ref[0]
    o_ref[0] = (gamma * out + xq).astype(o_ref.dtype)


# ----------------------------------------------------------------------------
# Wrapper (pallas_call plumbing); x is NCHW like the PyTorch module
# ----------------------------------------------------------------------------
def pam_forward(x, params, *, tq=128):
    B, C, H, W = x.shape
    N = H * W
    C8 = params["wq"].shape[1]
    assert C % 8 == 0 and params["wq"].shape == (C, C8)

    tq = min(tq, N)
    assert N % tq == 0, (N, tq)
    nq = N // tq
    # v7x megacore: also split the query-tile axis so both TensorCores stay
    # busy independent of B; scratch is recomputed per (b, shard).
    q_par = 2 if nq % 2 == 0 else 1
    nq_inner = nq // q_par

    # NCHW -> (B, N, C): the 1x1 convs become row-major matmuls (thin glue).
    x_nc = jnp.transpose(x.reshape(B, C, N), (0, 2, 1))

    # Fused, pre-transposed Q/K weights; bf16 MXU operands, f32 biases.
    wqkT = jnp.concatenate([params["wq"], params["wk"]], axis=1).T
    wqkT = wqkT.astype(jnp.bfloat16)                                # (2*C8, C)
    bqk = jnp.concatenate([params["bq"], params["bk"]]).astype(jnp.float32)
    bqk = bqk.reshape(2 * C8, 1)
    wv = params["wv"].astype(jnp.bfloat16)                          # (C, C)
    bv = params["bv"].reshape(1, C).astype(jnp.float32)
    gamma = params["gamma"].reshape(1).astype(jnp.float32)          # SMEM

    # NOTE: for very large N on v7x (64 MiB VMEM), tile the key/value axis
    # with a flash-style online softmax instead of holding full K/V scratch.
    out_nc = pl.pallas_call(
        pam_kernel,
        out_shape=jax.ShapeDtypeStruct((B, N, C), x.dtype),
        grid=(B, q_par, nq_inner),
        in_specs=[
            pl.BlockSpec((1, N, C), lambda b, p, qi: (b, 0, 0)),    # x[b]
            pl.BlockSpec((2 * C8, C), lambda b, p, qi: (0, 0)),     # [Wq|Wk]^T
            pl.BlockSpec((2 * C8, 1), lambda b, p, qi: (0, 0)),     # [bq;bk]
            pl.BlockSpec((C, C), lambda b, p, qi: (0, 0)),          # Wv
            pl.BlockSpec((1, C), lambda b, p, qi: (0, 0)),          # bv
            pl.BlockSpec(memory_space=pltpu.MemorySpace.SMEM),      # gamma
        ],
        out_specs=pl.BlockSpec(
            (1, tq, C), lambda b, p, qi: (b, p * nq_inner + qi, 0)),
        scratch_shapes=[
            pltpu.VMEM((2 * C8, N), jnp.float32),   # [Q ; K]^T (lane-dense)
            pltpu.VMEM((N, C), jnp.bfloat16),       # V
        ],
        compiler_params=pltpu.CompilerParams(
            dimension_semantics=("parallel", "parallel", "arbitrary"),
            vmem_limit_bytes=32 * 1024 * 1024),
    )(x_nc, wqkT, bqk, wv, bv, gamma)

    # (B, N, C) -> NCHW
    return jnp.transpose(out_nc, (0, 2, 1)).reshape(B, C, H, W)


# ----------------------------------------------------------------------------
# Pure-JAX reference (mirrors the PyTorch forward) for validation
# ----------------------------------------------------------------------------
def pam_reference(x, params):
    B, C, H, W = x.shape
    N = H * W
    x_nc = jnp.transpose(x.reshape(B, C, N), (0, 2, 1))             # (B, N, C)
    q = x_nc @ params["wq"] + params["bq"]                          # (B, N, C8)
    k = x_nc @ params["wk"] + params["bk"]
    v = x_nc @ params["wv"] + params["bv"]                          # (B, N, C)
    energy = jnp.einsum("bnd,bmd->bnm", q, k)
    attn = jax.nn.softmax(energy, axis=-1)
    out = jnp.einsum("bnm,bmc->bnc", attn, v)
    out = params["gamma"].reshape(()) * out + x_nc
    return jnp.transpose(out, (0, 2, 1)).reshape(B, C, H, W)


# ----------------------------------------------------------------------------
# Deterministic parameter construction (Conv2d 1x1 with bias => matmul + bias)
# ----------------------------------------------------------------------------
def make_pam_params(key, in_dim):
    c8 = in_dim // 8
    ks = jax.random.split(key, 7)
    s = 0.1
    return {
        "wq": jax.random.normal(ks[0], (in_dim, c8), jnp.float32) * s,
        "bq": jax.random.normal(ks[1], (c8,), jnp.float32) * s,
        "wk": jax.random.normal(ks[2], (in_dim, c8), jnp.float32) * s,
        "bk": jax.random.normal(ks[3], (c8,), jnp.float32) * s,
        "wv": jax.random.normal(ks[4], (in_dim, in_dim), jnp.float32) * s,
        "bv": jax.random.normal(ks[5], (in_dim,), jnp.float32) * s,
        # PyTorch initializes gamma to 0 (output == x). Use a nonzero value
        # here so the attention path is actually exercised in the demo.
        "gamma": jax.random.uniform(ks[6], (1,), jnp.float32, 0.1, 1.0),
    }


if __name__ == "__main__":
    B, C, H, W = 2, 64, 16, 16          # in_dim must be divisible by 8
    key = jax.random.PRNGKey(0)
    kx, kp = jax.random.split(key)
    x = jax.random.normal(kx, (B, C, H, W), jnp.float32)
    params = make_pam_params(kp, C)

    out = jax.jit(pam_forward)(x, params)
    out = jax.block_until_ready(out)

    assert out.shape == (B, C, H, W), out.shape
    assert bool(jnp.all(jnp.isfinite(out)))

    ref = pam_reference(x, params)
    # bf16 MXU operands + approx reciprocal => loose but structural tolerance.
    assert bool(jnp.allclose(out, ref, rtol=1e-1, atol=1e-1)), float(
        jnp.max(jnp.abs(out - ref)))
    print("KERNEL_OK")
</pallas_src>

<mosaic_0001>
module attributes {stable_mosaic.version = 11 : i64} {
  func.func @pam_kernel(%arg0: i32, %arg1: i32, %arg2: i32, %arg3: memref<1x256x64xf32, #tpu.memory_space<vmem>>, %arg4: memref<16x64xbf16, #tpu.memory_space<vmem>>, %arg5: memref<16x1xf32, #tpu.memory_space<vmem>>, %arg6: memref<64x64xbf16, #tpu.memory_space<vmem>>, %arg7: memref<1x64xf32, #tpu.memory_space<vmem>>, %arg8: memref<1xf32, #tpu.memory_space<smem>>, %arg9: memref<1x128x64xf32, #tpu.memory_space<vmem>>, %arg10: memref<16x256xf32, #tpu.memory_space<vmem>>, %arg11: memref<256x64xbf16, #tpu.memory_space<vmem>>) attributes {dimension_semantics = [#tpu.dimension_semantics<parallel>, #tpu.dimension_semantics<parallel>, #tpu.dimension_semantics<arbitrary>], iteration_bounds = array<i64: 2, 2, 1>, scalar_prefetch = 0 : i64, scratch_operands = 2 : i64, tpu.core_type = #tpu.core_type<tc>, window_params = [{transform_indices = @transform_0, window_bounds = array<i64: 1, 256, 64>}, {pipeline_mode = #tpu.pipeline_mode<synchronous>, transform_indices = @transform_1, window_bounds = array<i64: 16, 64>}, {pipeline_mode = #tpu.pipeline_mode<synchronous>, transform_indices = @transform_2, window_bounds = array<i64: 16, 1>}, {pipeline_mode = #tpu.pipeline_mode<synchronous>, transform_indices = @transform_3, window_bounds = array<i64: 64, 64>}, {pipeline_mode = #tpu.pipeline_mode<synchronous>, transform_indices = @transform_4, window_bounds = array<i64: 1, 64>}, {transform_indices = @transform_5, window_bounds = array<i64: 1>}, {transform_indices = @transform_6, window_bounds = array<i64: 1, 128, 64>}]} {
    %c0_i32 = arith.constant 0 : i32
    %0 = arith.cmpi eq, %arg2, %c0_i32 : i32
    %1 = arith.extui %0 : i1 to i32
    %c0_i32_0 = arith.constant 0 : i32
    %2 = arith.cmpi ne, %1, %c0_i32_0 : i32
    scf.if %2 {
      %c0_13 = arith.constant 0 : index
      %c0_14 = arith.constant 0 : index
      %c0_15 = arith.constant 0 : index
      %34 = vector.load %arg3[%c0_13, %c0_14, %c0_15] : memref<1x256x64xf32, #tpu.memory_space<vmem>>, vector<1x256x64xf32>
      %35 = vector.shape_cast %34 : vector<1x256x64xf32> to vector<256x64xf32>
      %36 = arith.truncf %35 : vector<256x64xf32> to vector<256x64xbf16>
      %c0_16 = arith.constant 0 : index
      %c0_17 = arith.constant 0 : index
      %37 = vector.load %arg4[%c0_16, %c0_17] : memref<16x64xbf16, #tpu.memory_space<vmem>>, vector<16x64xbf16>
      %cst_18 = arith.constant dense<0.000000e+00> : vector<16x256xf32>
      %38 = tpu.matmul %37, %36, %cst_18 {dimension_numbers = #tpu.dot_dimension_numbers<[1], [1], [0], [0], [0, 0, 1, 0], [], []>} : vector<16x64xbf16>, vector<256x64xbf16>, vector<16x256xf32> -> vector<16x256xf32>
      %c0_19 = arith.constant 0 : index
      %c0_20 = arith.constant 0 : index
      %39 = vector.load %arg5[%c0_19, %c0_20] : memref<16x1xf32, #tpu.memory_space<vmem>>, vector<16x1xf32>
      %40 = vector.broadcast %39 : vector<16x1xf32> to vector<16x256xf32>
      %41 = arith.addf %38, %40 : vector<16x256xf32>
      %c0_21 = arith.constant 0 : index
      %c0_22 = arith.constant 0 : index
      %42 = vector.load %arg10[%c0_21, %c0_22] : memref<16x256xf32, #tpu.memory_space<vmem>>, vector<16x256xf32>
      tpu.vector_store %arg10[%c0_21, %c0_22], %41 {strides = array<i32>} : memref<16x256xf32, #tpu.memory_space<vmem>>, vector<16x256xf32>,
      %c0_23 = arith.constant 0 : index
      %c0_24 = arith.constant 0 : index
      %43 = vector.load %arg6[%c0_23, %c0_24] : memref<64x64xbf16, #tpu.memory_space<vmem>>, vector<64x64xbf16>
      %cst_25 = arith.constant dense<0.000000e+00> : vector<256x64xf32>
      %44 = tpu.matmul %36, %43, %cst_25 {dimension_numbers = #tpu.dot_dimension_numbers<[1], [0], [0], [1], [0, 0, 1, 1], [], []>} : vector<256x64xbf16>, vector<64x64xbf16>, vector<256x64xf32> -> vector<256x64xf32>
      %c0_26 = arith.constant 0 : index
      %c0_27 = arith.constant 0 : index
      %45 = vector.load %arg7[%c0_26, %c0_27] : memref<1x64xf32, #tpu.memory_space<vmem>>, vector<1x64xf32>
      %46 = vector.broadcast %45 : vector<1x64xf32> to vector<256x64xf32>
      %47 = arith.addf %44, %46 : vector<256x64xf32>
      %48 = arith.truncf %47 : vector<256x64xf32> to vector<256x64xbf16>
      %c0_28 = arith.constant 0 : index
      %c0_29 = arith.constant 0 : index
      %49 = vector.load %arg11[%c0_28, %c0_29] : memref<256x64xbf16, #tpu.memory_space<vmem>>, vector<256x64xbf16>
      tpu.vector_store %arg11[%c0_28, %c0_29], %48 {strides = array<i32>} : memref<256x64xbf16, #tpu.memory_space<vmem>>, vector<256x64xbf16>,
    } else {
    }
    %c1_i32 = arith.constant 1 : i32
    %3 = arith.muli %arg1, %c1_i32 : i32
    %4 = arith.addi %3, %arg2 : i32
    %c128_i32 = arith.constant 128 : i32
    %5 = arith.muli %4, %c128_i32 : i32
    %6 = tpu.assume_multiple %5, 128 : i32
    %c0 = arith.constant 0 : index
    %7 = arith.index_cast %6 : i32 to index
    %c0_1 = arith.constant 0 : index
    %8 = vector.load %arg3[%c0, %7, %c0_1] : memref<1x256x64xf32, #tpu.memory_space<vmem>>, vector<1x128x64xf32>
    %9 = vector.shape_cast %8 : vector<1x128x64xf32> to vector<128x64xf32>
    %c0_2 = arith.constant 0 : index
    %10 = arith.index_cast %6 : i32 to index
    %11 = vector.load %arg10[%c0_2, %10] : memref<16x256xf32, #tpu.memory_space<vmem>>, vector<8x128xf32>
    %c8 = arith.constant 8 : index
    %c0_3 = arith.constant 0 : index
    %12 = vector.load %arg10[%c8, %c0_3] : memref<16x256xf32, #tpu.memory_space<vmem>>, vector<8x256xf32>
    %cst = arith.constant dense<0.000000e+00> : vector<128x256xf32>
    %13 = tpu.matmul %11, %12, %cst {dimension_numbers = #tpu.dot_dimension_numbers<[0], [0], [1], [1], [0, 1, 1, 1], [], []>} : vector<8x128xf32>, vector<8x256xf32>, vector<128x256xf32> -> vector<128x256xf32>
    %cst_4 = arith.constant dense<0xFF800000> : vector<128xf32>
    %14 = vector.multi_reduction <maximumf>, %13, %cst_4 [1] : vector<128x256xf32> to vector<128xf32>
    %15 = vector.shape_cast %14 : vector<128xf32> to vector<128x1xf32>
    %16 = vector.broadcast %15 : vector<128x1xf32> to vector<128x256xf32>
    %17 = arith.subf %13, %16 : vector<128x256xf32>
    %18 = math.exp %17 : vector<128x256xf32>
    %cst_5 = arith.constant dense<0.000000e+00> : vector<128xf32>
    %19 = vector.multi_reduction <add>, %18, %cst_5 [1] : vector<128x256xf32> to vector<128xf32>
    %20 = vector.shape_cast %19 : vector<128xf32> to vector<128x1xf32>
    %21 = arith.truncf %18 : vector<128x256xf32> to vector<128x256xbf16>
    %c0_6 = arith.constant 0 : index
    %c0_7 = arith.constant 0 : index
    %22 = vector.load %arg11[%c0_6, %c0_7] : memref<256x64xbf16, #tpu.memory_space<vmem>>, vector<256x64xbf16>
    %cst_8 = arith.constant dense<0.000000e+00> : vector<128x64xf32>
    %23 = tpu.matmul %21, %22, %cst_8 {dimension_numbers = #tpu.dot_dimension_numbers<[1], [0], [0], [1], [0, 0, 1, 1], [], []>} : vector<128x256xbf16>, vector<256x64xbf16>, vector<128x64xf32> -> vector<128x64xf32>
    %24 = tpu.reciprocal %20 {approx = true} : vector<128x1xf32> -> vector<128x1xf32>
    %25 = vector.broadcast %24 : vector<128x1xf32> to vector<128x64xf32>
    %26 = arith.mulf %23, %25 : vector<128x64xf32>
    %c0_9 = arith.constant 0 : index
    %27 = memref.load %arg8[%c0_9] : memref<1xf32, #tpu.memory_space<smem>>
    %28 = vector.broadcast %27 : f32 to vector<128x64xf32>
    %29 = arith.mulf %28, %26 : vector<128x64xf32>
    %30 = arith.addf %29, %9 : vector<128x64xf32>
    %c0_10 = arith.constant 0 : index
    %c0_11 = arith.constant 0 : index
    %c0_12 = arith.constant 0 : index
    %31 = vector.load %arg9[%c0_10, %c0_11, %c0_12] : memref<1x128x64xf32, #tpu.memory_space<vmem>>, vector<1x128x64xf32>
    %32 = vector.shape_cast %31 : vector<1x128x64xf32> to vector<128x64xf32>
    %33 = vector.shape_cast %30 : vector<128x64xf32> to vector<1x128x64xf32>
    tpu.vector_store %arg9[%c0_10, %c0_11, %c0_12], %33 {strides = array<i32>} : memref<1x128x64xf32, #tpu.memory_space<vmem>>, vector<1x128x64xf32>,
    return
  }
  func.func @transform_0(%arg0: i32, %arg1: i32, %arg2: i32) -> (i32, i32, i32) {
    %c0_i32 = arith.constant 0 : i32
    %c0_i32_0 = arith.constant 0 : i32
    %c0_i32_1 = arith.constant 0 : i32
    return %arg0, %c0_i32, %c0_i32_0 : i32, i32, i32
  }
  func.func @transform_1(%arg0: i32, %arg1: i32, %arg2: i32) -> (i32, i32) {
    %c0_i32 = arith.constant 0 : i32
    %c0_i32_0 = arith.constant 0 : i32
    %c0_i32_1 = arith.constant 0 : i32
    return %c0_i32, %c0_i32_0 : i32, i32
  }
  func.func @transform_2(%arg0: i32, %arg1: i32, %arg2: i32) -> (i32, i32) {
    %c0_i32 = arith.constant 0 : i32
    %c0_i32_0 = arith.constant 0 : i32
    %c0_i32_1 = arith.constant 0 : i32
    return %c0_i32, %c0_i32_0 : i32, i32
  }
  func.func @transform_3(%arg0: i32, %arg1: i32, %arg2: i32) -> (i32, i32) {
    %c0_i32 = arith.constant 0 : i32
    %c0_i32_0 = arith.constant 0 : i32
    %c0_i32_1 = arith.constant 0 : i32
    return %c0_i32, %c0_i32_0 : i32, i32
  }
  func.func @transform_4(%arg0: i32, %arg1: i32, %arg2: i32) -> (i32, i32) {
    %c0_i32 = arith.constant 0 : i32
    %c0_i32_0 = arith.constant 0 : i32
    %c0_i32_1 = arith.constant 0 : i32
    return %c0_i32, %c0_i32_0 : i32, i32
  }
  func.func @transform_5(%arg0: i32, %arg1: i32, %arg2: i32) -> i32 {
    %c0_i32 = arith.constant 0 : i32
    %c0_i32_0 = arith.constant 0 : i32
    return %c0_i32 : i32
  }
  func.func @transform_6(%arg0: i32, %arg1: i32, %arg2: i32) -> (i32, i32, i32) {
    %c1_i32 = arith.constant 1 : i32
    %0 = arith.muli %arg1, %c1_i32 : i32
    %1 = arith.addi %0, %arg2 : i32
    %c0_i32 = arith.constant 0 : i32
    %c0_i32_0 = arith.constant 0 : i32
    return %arg0, %1, %c0_i32 : i32, i32, i32
  }
}

</mosaic_0001>

<bundles_post_ra>
// kernel: pam_forward.1
= control target key start
LH: loop header
LB: loop body
LE: loop exit
PB: predicated region body
PF: predicated region fallthrough
CT: control target
= control target key end

     0   :  { %s2751_s0 = inlined_call_operand.hbm [shape: f32[2,256,64], index: 0, kind: input, shape index: {}]   ;;  %s2752_s1 = inlined_call_operand.vmem [shape: bf16[16,64], index: 1, kind: input, shape index: {}]   ;;  %s2753_s2 = inlined_call_operand.vmem [shape: f32[16,1], index: 2, kind: input, shape index: {}]   ;;  %s2754_s3 = inlined_call_operand.vmem [shape: bf16[64,64], index: 3, kind: input, shape index: {}]   ;;  %s2755_s4 = inlined_call_operand.vmem [shape: f32[1,64], index: 4, kind: input, shape index: {}]   ;;  %s2756_s5 = inlined_call_operand.<no memory space> [shape: f32[1], index: 5, kind: input, shape index: {}]   ;;  %s2757_s6 = inlined_call_operand.hbm [shape: f32[2,256,64], index: 6, kind: output, shape index: {}]  }
   0x1   :  { %11 = sst [smem:[#allocation4]] %s2756_s5 }
   0x2   :  { %12 = vsyncpa [#allocation6], 0 }
   0x3   :  { %14 = vsyncpa [#allocation6 + $0x1], 0 }
   0x4   :  { %15 = vsyncpa [#allocation7], 0 }
   0x5   :  { %17 = vsyncpa [#allocation7 + $0x1], 0  ;;  %s2102_s23 = smov 0   ;;  %s2104_s24 = smov 0  }
   0x6   :  { %s2106_s25 = smov 0   ;;  %s2108_s26 = smov 0  }
   0x7   :  { %s2110_s27 = smov 0   ;;  %s2112_s28 = smov 0  }
   0x8   :  { %s2114_s29 = smov 0   ;;  %s2116_s30 = smov 0  }
   0x9   :  { %s2118_s5 = smov 0   ;;  %s2120_s7 = smov 0  }
   0xa   :  { %s2122_s8 = smov 0  }
   0xb LB: > { %2762 = sst [smem:[#allocation11_spill]] %s2050_s7  ;;  %s1484_s9 = sadd.s32 4294967295, %s2054_s8   ;;  %s2054_s8 = sphi %s2122_s8, %s23_s8   ;;  %s2050_s7 = sphi %s2120_s7, %s2775_s7   ;;  %s2046_s5 = sphi %s2118_s5, %s2783_s5   ;;  %s2042_s30 = sphi %s2116_s30, %s2773_s30   ;;  %s2038_s29 = sphi %s2114_s29, %s2782_s29   ;;  %s2034_s28 = sphi %s2112_s28, %s2781_s28   ;;  %s2030_s27 = sphi %s2110_s27, %s2780_s27   ;;  %s2026_s26 = sphi %s2108_s26, %s2779_s26   ;;  %s2022_s25 = sphi %s2106_s25, %s2778_s25   ;;  %s2018_s24 = sphi %s2104_s24, %s2777_s24   ;;  %s2014_s23 = sphi %s2102_s23, %s2776_s23  }
   0xc   : > { %s1485_s10 = sadd.s32 4294967294, %s2054_s8   ;;  %s38_s11 = sadd.s32 1, %s2046_s5 }
   0xd   : > { %s42_s12 = sadd.s32 1, %s2050_s7  ;;  %p40_p0 = scmp.ge.s32.totalorder %s38_s11, 2 }
   0xe   : > { %s49_s13 = sadd.s32 1, %s2034_s28  ;;  %p56_p1 = scmp.ne.s32.totalorder %s2034_s28, %s2030_s27 }
   0xf   : > { %p57_p2 = scmp.eq.s32.totalorder %s2054_s8, 0  ;;  %s2785_s11 = smov (%p40_p0, %s38_s11), 0 }
  0x10   : > { %2763 = sst [smem:[#allocation12_spill]] %s2785_s11  ;;  %s2787_s12 = smov (!%p40_p0, %s42_s12), %s2050_s7 }
  0x11   : > { %p2166_p3 = por %p57_p2, %p56_p1  ;;  %p62_p4 = scmp.ne.s32.totalorder %s2030_s27, %s2026_s26 }
  0x12   : > { %p44_p5 = scmp.ge.s32.totalorder %s2787_s12, 2  ;;  %p63_p6 = scmp.eq.s32.totalorder %s1484_s9, 0 }
  0x13   : > { %s180_s15 = ssub.s32 %s2046_s5, %s2785_s11  ;;  %s184_s16 = sadd.s32 1, %s2022_s25 }
  0x14   : > { %s2789_s12 = smov (%p44_p5, %s2787_s12), 0  ;;  %p2176_p7 = por %p63_p6, %p62_p4 }
  0x15   : > { %2765 = sst [smem:[#allocation13_spill]] %s2789_s12  ;;  %p194_p8 = scmp.ne.s32.totalorder %s2022_s25, %s2018_s24 }
  0x16   : > { %s46_s18 = ssub.s32 %s2050_s7, %s2789_s12  ;;  %p195_p9 = scmp.eq.s32.totalorder %s1484_s9, 3 }
  0x17   : > { %p47_p10 = scmp.eq.s32.totalorder %s46_s18, 0  ;;  %s181_s19 = sor.u32 %s180_s15, %s46_s18 }
  0x18   : > { %p182_p11 = scmp.eq.s32.totalorder %s181_s19, 0  ;;  %p2184_p12 = por %p195_p9, %p194_p8 }
  0x19   : > { %s2189_s21 = scalar_select %p47_p10, %s2034_s28, %s49_s13  }
  0x1a   : > { %s2767_s20 = scalar_select %p2184_p12, 1, 0 }
  0x1b   : > { %s2192_s22 = scalar_select %p182_p11, %s2022_s25, %s184_s16  }
  0x1c   : > { %p200_p13 = scmp.ne.s32.totalorder %s2018_s24, %s2014_s23  ;;  %p201_p0 = scmp.eq.s32.totalorder %s1485_s10, 3 }
  0x1d   : > { %p1704_p1 = scmp.lt.s32.totalorder %s2054_s8, 4  ;;  %s236_s9 = sand.u32 1, %s2034_s28  }
  0x1e   : > { %p2197_p2 = por %p201_p0, %p200_p13  ;;  %s1488_s15 = sshll.u32 %s236_s9, 8 }
  0x1f   : > { %s1541_s18 = sshll.u32 %s2050_s7, 12  ;;  %s240_s13 = scalar_lea.vmem [#allocation5], %s1488_s15 }
  0x20   : > { %s2768_s26 = scalar_select %p2197_p2, 1, 0 }
  0x21   : > { %s2206_s11 = scalar_lea.hbm %s2751_s0, %s1541_s18  ;;  %s247_s16 = sshll.u32 %s240_s13, 4  ;;  %s2208_s16 = int_to_ptr.vmem [resolvable:$true] %s247_s16 }
  0x22   : > { %p2212_p4 = pnand %p1704_p1, %p2166_p3  ;;  %s2217_s7 = scalar_lea.sflag [#allocation6], %s236_s9 }
  0x23   : > { %s1902_s12 = scalar_lea.hbm %s2206_s11, 4096  ;;  %s1907_s14 = scalar_lea.hbm %s2751_s0, 8192 }
  0x24   : > { %p1903_p6 = scmp.ne.s32.totalorder %s2206_s11, %s1902_s12  ;;  %p1904_p8 = pneg %p2212_p4 }
  0x25   : > { %p1908_p3 = scmp.lt.u32.totalorder %s2206_s11, %s2751_s0  ;;  %p1909_p11 = scmp.lt.u32.totalorder %s1907_s14, %s1902_s12 }
  0x26   : > { %p1905_p9 = pnand %p1904_p8, %p1903_p6  ;;  %p1911_p0 = scmp.lt.u32.totalorder %s1902_s12, %s2206_s11 }
  0x27   : > { %p1910_p13 = por %p1909_p11, %p1908_p3 }
  0x28   : > { %p1906_p10 = pneg %p1905_p9 }
  0x29   : > { %p1912_p1 = por %p1911_p0, %p1910_p13 }
  0x2b   : > { %p1913_p5 = pnand %p1912_p1, %p1906_p10 }
  0x2d   : > { %1916 = shalt.err (!%p1913_p5)
}
  0x2e   : > { %s1917_s9 = scalar_lea.vmem %s2208_s16, 4096  ;;  %s2056_s15 = smov [#allocation5]  }
  0x2f   : > { %p1918_p6 = scmp.ne.s32.totalorder %s2208_s16, %s1917_s9  ;;  %s1922_s18 = sshll.u32 %s2056_s15, 4  ;;  %s1923_s18 = int_to_ptr.vmem [resolvable:$false] %s1922_s18 }
  0x30   : > { %s1924_s19 = scalar_lea.vmem %s1923_s18, 8192  ;;  %p1925_p12 = scmp.lt.s32.totalorder %s2208_s16, %s1923_s18 }
  0x31   : > { %p1920_p9 = pnand %p1918_p6, %p1904_p8  ;;  %p1926_p3 = scmp.lt.s32.totalorder %s1924_s19, %s1917_s9 }
  0x33   : > { %p1921_p2 = pneg %p1920_p9  ;;  %p1927_p11 = por %p1926_p3, %p1925_p12 }
  0x35   : > { %p1928_p13 = pnand %p1927_p11, %p1921_p2 }
  0x37   : > { %1931 = shalt.err (!%p1928_p13)
}
  0x38   : > { %s2057_s12 = smov 128   ;;  %s2058_s14 = smov 8  }
  0x39   : > { %1699 = dma.hbm_to_vmem [thread:$0]  (!%p2212_p4), %s2206_s11, 4096, %s2208_s16, %s2217_s7, %s2057_s12, %s2057_s12, %s2058_s14  }
  0x3a   : > { %p255_p5 = scmp.lt.s32.totalorder %s2054_s8, 5  ;;  %p2770_p8 = scmp.ge.s32.totalorder %s2054_s8, 1 }
  0x3c   : > { %p256_p10 = pnand %p2770_p8, %p255_p5 }
  0x3d   : > { %s261_s13 = sand.u32 (!%p256_p10), 1, %s2030_s27  }
  0x3e   : > { %259 = sbr.rel (%p256_p10) target bundleno = 1167 (0x48f), region = 44  ;;  %s1492_s9 = sshll.u32 (!%p256_p10), %s261_s13, 8 }
  0x3f   : > { %s262_s15 = scalar_lea.sflag (!%p256_p10), [#allocation6], %s261_s13  ;;  %s2249_s18 = scalar_lea.vmem (!%p256_p10), [#allocation5], %s1492_s9 }
  0x45   : > { %2005 = dma.done.wait (%p2176_p7), %s262_s15, 4096  }
  0x46   : > { %2007 = vsyncadd (%p2176_p7), %s262_s15, 4294963200  ;;  %v2059_v0 = vmov 0   ;;  %v317_v1 = vld [vmem:[%s2249_s18 + $0x80] sm:$0xff]  ;;  %v318_v2 = vld [vmem:[%s2249_s18 + $0x88] sm:$0xff]  ;;  %vm368_vm0 = vcmask 523264   ;;  %v2060_v61 = vmov 0.0  }
  0x47   : > { %1800 = vset.pattern.permute.xlu0 %v2059_v0  ;;  %v301_v3 = vld [vmem:[%s2249_s18] sm:$0xff]  ;;  %v2258_v4 = vpack.c.bf16 %v318_v2, %v317_v1  ;;  %v302_v5 = vld [vmem:[%s2249_s18 + $0x8] sm:$0xff]  ;;  %v319_v6 = vld [vmem:[%s2249_s18 + $0x90] sm:$0xff]  ;;  %s1517_s13 = sshll.u32 %s2038_s29, 7  ;;  %vm757_vm1 = vcmask 64512   ;;  %s1537_s16 = sshll.u32 %s2042_s30, 5 }
  0x48   : > { %v320_v7 = vld [vmem:[%s2249_s18 + $0x98] sm:$0xff]  ;;  %v333_v8 = vpack.c.bf16 %v302_v5, %v301_v3  ;;  %v303_v10 = vld [vmem:[%s2249_s18 + $0x10] sm:$0xff]  ;;  %v321_v14 = vld [vmem:[%s2249_s18 + $0xa0] sm:$0xff]  ;;  %s718_s9 = sshra.s32 %s1517_s13, 7  ;;  %s2606_s11 = scalar_lea.vmem %s2249_s18, %s1517_s13 [#allocation5] }
  0x49   : > { %v2263_v9 = vpack.c.bf16 %v320_v7, %v319_v6  ;;  %1684 = vmatprep.subr.msk.bf16.mxu0 %vm368_vm0, %v2258_v4  ;;  %v304_v11 = vld [vmem:[%s2249_s18 + $0x18] sm:$0xff]  ;;  %v322_v15 = vld [vmem:[%s2249_s18 + $0xa8] sm:$0xff]  ;;  %v305_v18 = vld [vmem:[%s2249_s18 + $0x20] sm:$0xff]  ;;  %s1518_s15 = sshll.u32 %s718_s9, 3  ;;  %s1536_s13 = sshll.u32 %s2038_s29, 4 }
  0x4a   : > { %v373_v12 = vsel %vm368_vm0, %v333_v8, 0  ;;  %1652 = vmatprep.mubr.msk.bf16.mxu1 %vm368_vm0, %v333_v8  ;;  %v2273_v13 = vpack.c.bf16 %v304_v11, %v303_v10  ;;  %v2279_v17 = vpack.c.bf16 %v322_v15, %v321_v14  ;;  %v306_v19 = vld [vmem:[%s2249_s18 + $0x28] sm:$0xff]  ;;  %v1801_v20 = vld [vmem:[%s2752_s1] sm:$0xff]   ;;  %v323_v24 = vld [vmem:[%s2249_s18 + $0xb0] sm:$0xff]  ;;  %s721_s7 = scalar_lea.vmem [#allocation2], %s1518_s15  ;;  %s1320_s15 = sld [smem:[#allocation4]] }
  0x4b   : > { %1543 = vmatpush3.bf16.xpose.msra.mxu0 %v373_v12  ;;  %v351_v21 = vld [vmem:[%s2753_s2] sm:$0xff]  ;;  %1558 = vmatprep.mubr.msk.bf16.mxu0 %vm368_vm0, %v1801_v20  ;;  %v352_v22 = vld [vmem:[%s2753_s2 + $0x8] sm:$0xff]  ;;  %v2295_v23 = vpack.c.bf16 %v306_v19, %v305_v18  ;;  %v324_v25 = vld [vmem:[%s2249_s18 + $0xb8] sm:$0xff]  ;;  %s1385_s10 = sadd.s32 %s1537_s16, %s1536_s13  ;;  %p2771_p12 = scmp.ne.s32.totalorder %s2767_s20, 0 }
  0x4c   : > { %1685 = vmatprep.subr.msk.bf16.mxu0 %vm368_vm0, %v2263_v9  ;;  %v376_v16 = vsel %vm368_vm0, %v2273_v13, 0  ;;  %355 = vperm.xlu0 %1800, %v351_v21   ;;  %v2301_v27 = vpack.c.bf16 %v324_v25, %v323_v24  ;;  %v307_v28 = vld [vmem:[%s2249_s18 + $0x30] sm:$0xff]  ;;  %v308_v29 = vld [vmem:[%s2249_s18 + $0x38] sm:$0xff]  ;;  %v325_v31 = vld [vmem:[%s2249_s18 + $0xc0] sm:$0xff]  ;;  %s1538_s29 = sshll.u32 %s1385_s10, 7 }
  0x4d   : > { %v379_v26 = vsel %vm368_vm0, %v2295_v23, 0  ;;  %v2307_v30 = vpack.c.bf16 %v308_v29, %v307_v28  ;;  %v326_v32 = vld [vmem:[%s2249_s18 + $0xc8] sm:$0xff]  ;;  %v309_v35 = vld [vmem:[%s2249_s18 + $0x40] sm:$0xff]  ;;  %v327_v38 = vld [vmem:[%s2249_s18 + $0xd0] sm:$0xff]  ;;  %s2680_s14 = scalar_lea.hbm %s2757_s6, %s1538_s29 }
  0x4e   : > { %v2313_v34 = vpack.c.bf16 %v326_v32, %v325_v31  ;;  %v310_v36 = vld [vmem:[%s2249_s18 + $0x48] sm:$0xff]  ;;  %v328_v39 = vld [vmem:[%s2249_s18 + $0xd8] sm:$0xff]  ;;  %v311_v42 = vld [vmem:[%s2249_s18 + $0x50] sm:$0xff] }
  0x4f   : > { %v382_v33 = vsel %vm368_vm0, %v2307_v30, 0  ;;  %v2319_v37 = vpack.c.bf16 %v310_v36, %v309_v35  ;;  %v2325_v41 = vpack.c.bf16 %v328_v39, %v327_v38  ;;  %v312_v43 = vld [vmem:[%s2249_s18 + $0x58] sm:$0xff]  ;;  %v329_v45 = vld [vmem:[%s2249_s18 + $0xe0] sm:$0xff]  ;;  %v330_v46 = vld [vmem:[%s2249_s18 + $0xe8] sm:$0xff] }
  0x50   : > { %360 = vperm.xlu0 %1800, %v352_v22   ;;  %v338_v44 = vpack.c.bf16 %v312_v43, %v311_v42  ;;  %v2334_v48 = vpack.c.bf16 %v330_v46, %v329_v45  ;;  %v313_v49 = vld [vmem:[%s2249_s18 + $0x60] sm:$0xff]  ;;  %v314_v50 = vld [vmem:[%s2249_s18 + $0x68] sm:$0xff]  ;;  %v331_v52 = vld [vmem:[%s2249_s18 + $0xf0] sm:$0xff] }
  0x51   : > { %v385_v40 = vsel %vm368_vm0, %v2319_v37, 0  ;;  %v339_v51 = vpack.c.bf16 %v314_v50, %v313_v49  ;;  %v332_v53 = vld [vmem:[%s2249_s18 + $0xf8] sm:$0xff]  ;;  %v315_v56 = vld [vmem:[%s2249_s18 + $0x70] sm:$0xff]  ;;  %v1802_v60 = vld [vmem:[%s2754_s3] sm:$0xff]  }
  0x52   : > { %v388_v47 = vsel %vm368_vm0, %v338_v44, 0  ;;  %v348_v55 = vpack.c.bf16 %v332_v53, %v331_v52  ;;  %v316_v57 = vld [vmem:[%s2249_s18 + $0x78] sm:$0xff]  ;;  %1644 = vmatprep.subr.bf16.mxu1 %v1802_v60  ;;  %v1803_v11 = vld [vmem:[%s2754_s3 + $0x8] sm:$0xff]   ;;  %v1804_v12 = vld [vmem:[%s2754_s3 + $0x10] sm:$0xff]  }
  0x53   : > { %1545 = vmatpush3.bf16.xpose.msra.mxu0 %v376_v16  ;;  %v391_v54 = vsel %vm368_vm0, %v339_v51, 0  ;;  %v340_v58 = vpack.c.bf16 %v316_v57, %v315_v56  ;;  %1645 = vmatpush3.bf16.msra.mxu1 %v1802_v60  ;;  %v1805_v14 = vld [vmem:[%s2754_s3 + $0x18] sm:$0xff]   ;;  %v2424_v29 = vld [vmem:[%s2755_s4] ss:$0 sm:$0xff] }
  0x54   : > { %1686 = vmatprep.subr.msk.bf16.mxu0 %vm368_vm0, %v2279_v17  ;;  %1646 = vmatprep.subr.bf16.mxu1 %v1803_v11 }
  0x55   : > { %v394_v59 = vsel %vm368_vm0, %v340_v58, 0 }
  0x57   : > { %1647 = vmatpush3.bf16.msra.mxu1 %v1803_v11 }
  0x58   : > { %1648 = vmatprep.subr.bf16.mxu1 %v1804_v12 }
  0x5b   : > { %1547 = vmatpush3.bf16.xpose.msra.mxu0 %v379_v26  ;;  %1649 = vmatpush3.bf16.msra.mxu1 %v1804_v12 }
  0x5c   : > { %1687 = vmatprep.subr.msk.bf16.mxu0 %vm368_vm0, %v2301_v27  ;;  %1650 = vmatprep.subr.bf16.mxu1 %v1805_v14 }
  0x5f   : > { %1651 = vmatpush3.bf16.msra.mxu1 %v1805_v14 }
  0x62   : > { %1653 = vmatmul.mubr.msk.bf16.vlgmr.msra.gmra.mrb[0].mxu1 %vm368_vm0, %v2273_v13 }
  0x63   : > { %1549 = vmatpush3.bf16.xpose.msra.mxu0 %v382_v33  ;;  %1656 = vmatprep.mubr.msk.bf16.mxu1 %vm368_vm0, %v2295_v23 }
  0x64   : > { %1688 = vmatprep.subr.msk.bf16.mxu0 %vm368_vm0, %v2313_v34 }
  0x6a   : > { %1657 = vmatmul.mubr.msk.bf16.gmra.mrb[4].mxu1 %vm368_vm0, %v2307_v30 }
  0x6b   : > { %1551 = vmatpush3.bf16.xpose.msra.mxu0 %v385_v40  ;;  %1660 = vmatprep.mubr.msk.bf16.mxu1 %vm368_vm0, %v2319_v37 }
  0x6c   : > { %1689 = vmatprep.subr.msk.bf16.mxu0 %vm368_vm0, %v2325_v41 }
  0x72   : > { %1661 = vmatmul.mubr.msk.bf16.gmra.mrb[8].mxu1 %vm368_vm0, %v338_v44 }
  0x73   : > { %1553 = vmatpush3.bf16.xpose.msra.mxu0 %v388_v47  ;;  %1664 = vmatprep.mubr.msk.bf16.mxu1 %vm368_vm0, %v339_v51 }
  0x74   : > { %1690 = vmatprep.subr.msk.bf16.mxu0 %vm368_vm0, %v2334_v48 }
  0x7a   : > { %1665 = vmatmul.mubr.msk.bf16.gmra.mrb[12].mxu1 %vm368_vm0, %v340_v58 }
  0x7b   : > { %1555 = vmatpush3.bf16.xpose.msra.mxu0 %v391_v54  ;;  %1668 = vmatprep.mubr.msk.bf16.mxu1 %vm368_vm0, %v2258_v4 }
  0x7c   : > { %1691 = vmatprep.subr.msk.bf16.mxu0 %vm368_vm0, %v348_v55 }
  0x82   : > { %1669 = vmatmul.mubr.msk.bf16.gmra.mrb[16].mxu1 %vm368_vm0, %v2263_v9 }
  0x83   : > { %1557 = vmatpush3.bf16.xpose.msra.mxu0 %v394_v59  ;;  %1672 = vmatprep.mubr.msk.bf16.mxu1 %vm368_vm0, %v2279_v17 }
  0x8a   : > { %1559 = vmatmul.mubr.msk.bf16.vlgmr.msra.gmra.mrb[0].mxu0 %vm368_vm0, %v1801_v20  ;;  %1673 = vmatmul.mubr.msk.bf16.gmra.mrb[20].mxu1 %vm368_vm0, %v2301_v27 }
  0x8b   : > { %870 = vmatprep.mubr.f32.mxu0 %v2060_v61  ;;  %1676 = vmatprep.mubr.msk.bf16.mxu1 %vm368_vm0, %v2313_v34 }
  0x92   : > { %1677 = vmatmul.mubr.msk.bf16.gmra.mrb[24].mxu1 %vm368_vm0, %v2325_v41 }
  0x93   : > { %1680 = vmatprep.mubr.msk.bf16.mxu1 %vm368_vm0, %v2334_v48 }
  0x9a   : > { %1681 = vmatmul.mubr.msk.bf16.gmra.mrb[28].mxu1 %vm368_vm0, %v348_v55 }
  0xcb   : > { %v356_v62 = vpop.permute.xlu0 %355 }
  0xcf   : > { %v361_v2 = vpop.permute.xlu0 %360 }
 0x135   : > { %v1654_v28 = vpop.f32.mrb[0].mxu1 }
 0x136   : > { %v540_v30 = vpop.f32.mrb[1].mxu1  ;;  %v549_v31 = vadd.f32 %v1654_v28, %v2424_v29 }
 0x137   : > { %v541_v32 = vadd.f32 %v2424_v29, %v540_v30  ;;  %v1655_v33 = vpop.f32.mrb[2].mxu1 }
 0x138   : > { %v552_v34 = vadd.f32 %v1655_v33, %v2424_v29  ;;  %v543_v35 = vpop.f32.mrb[3].mxu1 }
 0x139   : > { %v544_v36 = vadd.f32 %v2424_v29, %v543_v35 }
 0x13a   : > { %v668_v38 = vpack.c.bf16 %v552_v34, %v549_v31 }
 0x13b   : > { %v667_v41 = vpack.c.bf16 %v544_v36, %v541_v32 }
 0x13c   : > { %684 = vst.msk [vmem:[#allocation3 + $0x8] sm:$0xff] %vm368_vm0, %v668_v38 }
 0x13d   : > { %v1658_v37 = vpop.f32.mrb[4].mxu1  ;;  %683 = vst.msk [vmem:[#allocation3] sm:$0xff] %vm368_vm0, %v667_v41 }
 0x13e   : > { %v565_v39 = vadd.f32 %v1658_v37, %v2424_v29  ;;  %v556_v40 = vpop.f32.mrb[5].mxu1 }
 0x13f   : > { %v557_v42 = vadd.f32 %v2424_v29, %v556_v40  ;;  %v1659_v43 = vpop.f32.mrb[6].mxu1 }
 0x140   : > { %v568_v44 = vadd.f32 %v1659_v43, %v2424_v29  ;;  %v559_v45 = vpop.f32.mrb[7].mxu1 }
 0x141   : > { %v560_v46 = vadd.f32 %v2424_v29, %v559_v45 }
 0x142   : > { %v670_v48 = vpack.c.bf16 %v568_v44, %v565_v39 }
 0x143   : > { %v669_v51 = vpack.c.bf16 %v560_v46, %v557_v42  ;;  %v1176_v36 = vld [vmem:[#allocation3 + $0x8] sm:$0xff] }
 0x144   : > { %686 = vst.msk [vmem:[#allocation3 + $0x18] sm:$0xff] %vm368_vm0, %v670_v48 }
 0x145   : > { %v1662_v47 = vpop.f32.mrb[8].mxu1  ;;  %685 = vst.msk [vmem:[#allocation3 + $0x10] sm:$0xff] %vm368_vm0, %v669_v51 }
 0x146   : > { %v581_v49 = vadd.f32 %v1662_v47, %v2424_v29  ;;  %v572_v50 = vpop.f32.mrb[9].mxu1 }
 0x147   : > { %v573_v52 = vadd.f32 %v2424_v29, %v572_v50  ;;  %v1663_v53 = vpop.f32.mrb[10].mxu1 }
 0x148   : > { %v584_v54 = vadd.f32 %v1663_v53, %v2424_v29  ;;  %v575_v55 = vpop.f32.mrb[11].mxu1 }
 0x149   : > { %v576_v56 = vadd.f32 %v2424_v29, %v575_v55 }
 0x14a   : > { %v672_v58 = vpack.c.bf16 %v584_v54, %v581_v49 }
 0x14b   : > { %v1178_v50 = vld [vmem:[#allocation3 + $0x18] sm:$0xff] }
 0x14c   : > { %688 = vst.msk [vmem:[#allocation3 + $0x28] sm:$0xff] %vm368_vm0, %v672_v58  ;;  %v1177_v41 = vld [vmem:[#allocation3 + $0x10] sm:$0xff] }
 0x14d   : > { %v1666_v57 = vpop.f32.mrb[12].mxu1 }
 0x14e   : > { %v597_v59 = vadd.f32 %v1666_v57, %v2424_v29  ;;  %v588_v60 = vpop.f32.mrb[13].mxu1 }
 0x153   : > { %v1180_v57 = vld [vmem:[#allocation3 + $0x28] sm:$0xff] }
 0x15d   : > { %v454_v63 = vpop.f32.mrb[0].mxu0 }
 0x15e   : > { %v455_v0 = vadd.f32 %v454_v63, %v356_v62  ;;  %v456_v1 = vpop.f32.mrb[1].mxu0  ;;  %v1667_v63 = vpop.f32.mrb[14].mxu1 }
 0x15f   : > { %v457_v3 = vadd.f32 %v456_v1, %v356_v62  ;;  %v458_v5 = vpop.f32.mrb[2].mxu0  ;;  %v589_v62 = vadd.f32 %v2424_v29, %v588_v60  ;;  %v591_v1 = vpop.f32.mrb[15].mxu1 }
 0x160   : > { %463 = vst [vmem:[#allocation2] sm:$0xff] %v455_v0  ;;  %v459_v6 = vadd.f32 %v458_v5, %v361_v2  ;;  %v460_v7 = vpop.f32.mrb[3].mxu0  ;;  %v600_v0 = vadd.f32 %v1667_v63, %v2424_v29 }
 0x161   : > { %464 = vst [vmem:[#allocation2 + $0x8] sm:$0xff] %v457_v3  ;;  %v461_v8 = vadd.f32 %v460_v7, %v361_v2  ;;  %v592_v2 = vadd.f32 %v2424_v29, %v591_v1  ;;  %v1670_v3 = vpop.f32.mrb[16].mxu1 }
 0x162   : > { %465 = vst [vmem:[#allocation2 + $0x10] sm:$0xff] %v459_v6  ;;  %v674_v5 = vpack.c.bf16 %v600_v0, %v597_v59  ;;  %v604_v7 = vpop.f32.mrb[17].mxu1 }
 0x163   : > { %466 = vst [vmem:[#allocation2 + $0x18] sm:$0xff] %v461_v8  ;;  %806 = vmatprep.subr.mxu0 %v461_v8  ;;  %v673_v8 = vpack.c.bf16 %v592_v2, %v589_v62  ;;  %v1671_v11 = vpop.f32.mrb[18].mxu1 }
 0x164   : > { %807 = vmatpush1.msra.mxu0 %v459_v6  ;;  %v613_v6 = vadd.f32 %v1670_v3, %v2424_v29  ;;  %690 = vst.msk [vmem:[#allocation3 + $0x38] sm:$0xff] %vm368_vm0, %v674_v5  ;;  %v616_v12 = vadd.f32 %v1671_v11, %v2424_v29  ;;  %v607_v14 = vpop.f32.mrb[19].mxu1 }
 0x165   : > { %689 = vst.msk [vmem:[#allocation3 + $0x30] sm:$0xff] %vm368_vm0, %v673_v8 }
 0x16a   : > { %v722_v10 = vld [vmem:[%s721_s7] sm:$0xff]  ;;  %s291_s7 = sand.u32 1, %s2018_s24  }
 0x16b   : > { %725 = vxpose.xlu1.b32.start.end [1/1] (short) %v722_v10, 128  ;;  %v605_v10 = vadd.f32 %v2424_v29, %v604_v7  ;;  %s1493_s17 = sshll.u32 %s291_s7, 7  ;;  %s2690_s9 = scalar_lea.sflag [#allocation7], %s291_s7 }
 0x16c   : > { %v1181_v59 = vld [vmem:[#allocation3 + $0x30] sm:$0xff]  ;;  %s2616_s18 = scalar_lea.vmem [#allocation8], %s1493_s17 }
 0x16d   : > { %s1388_s30 = sshll.u32 %s2616_s18, 4  ;;  %s2682_s30 = int_to_ptr.vmem [resolvable:$true] %s1388_s30 }
 0x1eb   : > { %v741_v4 = vpop.trf.xlu1 }
 0x1ec   : > { %1519 = vmatmul.mubr.msk.f32.vlgmr.msra.gmra.mrb[4].mxu0 %vm757_vm1, %v741_v4  ;;  %v608_v4 = vadd.f32 %v2424_v29, %v607_v14 }
 0x1ed   : > { %876 = vmatprep.mubr.f32.mxu0 %v2060_v61 }
 0x1ef   : > { %v742_v9 = vpop.trf.xlu1 }
 0x1f0   : > { %1520 = vmatmul.mubr.msk.f32.gmra.mrb[6].mxu0 %vm757_vm1, %v742_v9  ;;  %v676_v9 = vpack.c.bf16 %v616_v12, %v613_v6 }
 0x1f1   : > { %882 = vmatprep.mubr.f32.mxu0 %v2060_v61 }
 0x1f2   : > { %692 = vst.msk [vmem:[#allocation3 + $0x48] sm:$0xff] %vm368_vm0, %v676_v9 }
 0x1f3   : > { %v743_v13 = vpop.trf.xlu1 }
 0x1f4   : > { %1521 = vmatmul.mubr.msk.f32.gmra.mrb[8].mxu0 %vm757_vm1, %v743_v13  ;;  %v675_v13 = vpack.c.bf16 %v608_v4, %v605_v10 }
 0x1f5   : > { %888 = vmatprep.mubr.f32.mxu0 %v2060_v61 }
 0x1f6   : > { %691 = vst.msk [vmem:[#allocation3 + $0x40] sm:$0xff] %vm368_vm0, %v675_v13 }
 0x1f7   : > { %v744_v15 = vpop.trf.xlu1 }
 0x1f8   : > { %1522 = vmatmul.mubr.msk.f32.gmra.mrb[10].mxu0 %vm757_vm1, %v744_v15  ;;  %v1674_v15 = vpop.f32.mrb[20].mxu1 }
 0x1f9   : > { %894 = vmatprep.mubr.f32.mxu0 %v2060_v61  ;;  %v1184_v33 = vld [vmem:[#allocation3 + $0x48] sm:$0xff] }
 0x1fb   : > { %v745_v16 = vpop.trf.xlu1 }
 0x1fc   : > { %1523 = vmatmul.mubr.msk.f32.gmra.mrb[12].mxu0 %vm757_vm1, %v745_v16  ;;  %v629_v16 = vadd.f32 %v1674_v15, %v2424_v29 }
 0x1fd   : > { %900 = vmatprep.mubr.f32.mxu0 %v2060_v61 }
 0x1ff   : > { %v746_v17 = vpop.trf.xlu1 }
 0x200   : > { %1524 = vmatmul.mubr.msk.f32.gmra.mrb[14].mxu0 %vm757_vm1, %v746_v17  ;;  %v620_v17 = vpop.f32.mrb[21].mxu1 }
 0x201   : > { %906 = vmatprep.mubr.f32.mxu0 %v2060_v61 }
 0x203   : > { %v747_v18 = vpop.trf.xlu1 }
 0x204   : > { %1525 = vmatmul.mubr.msk.f32.gmra.mrb[16].mxu0 %vm757_vm1, %v747_v18  ;;  %v621_v18 = vadd.f32 %v2424_v29, %v620_v17 }
 0x205   : > { %912 = vmatprep.mubr.f32.mxu0 %v2060_v61 }
 0x207   : > { %v748_v19 = vpop.trf.xlu1 }
 0x208   : > { %1526 = vmatmul.mubr.msk.f32.gmra.mrb[18].mxu0 %vm757_vm1, %v748_v19  ;;  %v1675_v19 = vpop.f32.mrb[22].mxu1 }
 0x209   : > { %918 = vmatprep.mubr.f32.mxu0 %v2060_v61 }
 0x20b   : > { %v749_v20 = vpop.trf.xlu1 }
 0x20c   : > { %1527 = vmatmul.mubr.msk.f32.gmra.mrb[20].mxu0 %vm757_vm1, %v749_v20  ;;  %v632_v20 = vadd.f32 %v1675_v19, %v2424_v29 }
 0x20d   : > { %924 = vmatprep.mubr.f32.mxu0 %v2060_v61 }
 0x20f   : > { %v750_v21 = vpop.trf.xlu1 }
 0x210   : > { %1528 = vmatmul.mubr.msk.f32.gmra.mrb[22].mxu0 %vm757_vm1, %v750_v21  ;;  %v623_v21 = vpop.f32.mrb[23].mxu1 }
 0x211   : > { %930 = vmatprep.mubr.f32.mxu0 %v2060_v61 }
 0x213   : > { %v751_v22 = vpop.trf.xlu1 }
 0x214   : > { %1529 = vmatmul.mubr.msk.f32.gmra.mrb[24].mxu0 %vm757_vm1, %v751_v22  ;;  %v624_v22 = vadd.f32 %v2424_v29, %v623_v21 }
 0x215   : > { %936 = vmatprep.mubr.f32.mxu0 %v2060_v61 }
 0x217   : > { %v752_v23 = vpop.trf.xlu1 }
 0x218   : > { %1530 = vmatmul.mubr.msk.f32.gmra.mrb[26].mxu0 %vm757_vm1, %v752_v23  ;;  %v678_v23 = vpack.c.bf16 %v632_v20, %v629_v16 }
 0x219   : > { %942 = vmatprep.mubr.f32.mxu0 %v2060_v61 }
 0x21a   : > { %694 = vst.msk [vmem:[#allocation3 + $0x58] sm:$0xff] %vm368_vm0, %v678_v23 }
 0x21b   : > { %v753_v24 = vpop.trf.xlu1 }
 0x21c   : > { %1531 = vmatmul.mubr.msk.f32.gmra.mrb[28].mxu0 %vm757_vm1, %v753_v24  ;;  %v677_v24 = vpack.c.bf16 %v624_v22, %v621_v18 }
 0x21d   : > { %948 = vmatprep.mubr.f32.mxu0 %v2060_v61 }
 0x21e   : > { %693 = vst.msk [vmem:[#allocation3 + $0x50] sm:$0xff] %vm368_vm0, %v677_v24 }
 0x21f   : > { %v754_v25 = vpop.trf.xlu1 }
 0x220   : > { %1532 = vmatmul.mubr.msk.f32.gmra.mrb[30].mxu0 %vm757_vm1, %v754_v25  ;;  %v1678_v25 = vpop.f32.mrb[24].mxu1 }
 0x221   : > { %954 = vmatprep.mubr.f32.mxu0 %v2060_v61  ;;  %v645_v28 = vadd.f32 %v1678_v25, %v2424_v29  ;;  %v636_v30 = vpop.f32.mrb[25].mxu1  ;;  %v1186_v43 = vld [vmem:[#allocation3 + $0x58] sm:$0xff] }
 0x222   : > { %v637_v31 = vadd.f32 %v2424_v29, %v636_v30  ;;  %v1679_v32 = vpop.f32.mrb[26].mxu1 }
 0x223   : > { %v755_v26 = vpop.trf.xlu1  ;;  %v648_v34 = vadd.f32 %v1679_v32, %v2424_v29  ;;  %v639_v35 = vpop.f32.mrb[27].mxu1 }
 0x224   : > { %1533 = vmatmul.mubr.msk.f32.gmra.mrb[32].mxu0 %vm757_vm1, %v755_v26  ;;  %v1183_v26 = vld [vmem:[#allocation3 + $0x40] sm:$0xff]  ;;  %v640_v37 = vadd.f32 %v2424_v29, %v639_v35  ;;  %v1682_v42 = vpop.f32.mrb[28].mxu1 }
 0x225   : > { %960 = vmatprep.mubr.f32.mxu0 %v2060_v61  ;;  %v671_v61 = vpack.c.bf16 %v576_v56, %v573_v52  ;;  %1580 = vmatprep.subr.bf16.mxu1 %v1183_v26  ;;  %v680_v38 = vpack.c.bf16 %v648_v34, %v645_v28  ;;  %v1185_v40 = vld [vmem:[#allocation3 + $0x50] sm:$0xff]  ;;  %v661_v44 = vadd.f32 %v1682_v42, %v2424_v29  ;;  %v652_v45 = vpop.f32.mrb[29].mxu1 }
 0x226   : > { %v679_v39 = vpack.c.bf16 %v640_v37, %v637_v31  ;;  %v653_v46 = vadd.f32 %v2424_v29, %v652_v45  ;;  %v1683_v47 = vpop.f32.mrb[30].mxu1 }
 0x227   : > { %v756_v27 = vpop.trf.xlu1  ;;  %687 = vst.msk [vmem:[#allocation3 + $0x20] sm:$0xff] %vm368_vm0, %v671_v61  ;;  %696 = vst.msk [vmem:[#allocation3 + $0x68] sm:$0xff] %vm368_vm0, %v680_v38  ;;  %v664_v48 = vadd.f32 %v1683_v47, %v2424_v29  ;;  %v655_v49 = vpop.f32.mrb[31].mxu1 }
 0x228   : > { %1534 = vmatmul.mubr.msk.f32.gmra.mrb[34].mxu0 %vm757_vm1, %v756_v27  ;;  %v1175_v27 = vld [vmem:[#allocation3] sm:$0xff]  ;;  %695 = vst.msk [vmem:[#allocation3 + $0x60] sm:$0xff] %vm368_vm0, %v679_v39  ;;  %v656_v51 = vadd.f32 %v2424_v29, %v655_v49  ;;  %v1182_v29 = vld [vmem:[#allocation3 + $0x38] sm:$0xff] }
 0x229   : > { %1581 = vmatpush3.bf16.msra.mxu1 %v1175_v27  ;;  %v682_v52 = vpack.c.bf16 %v664_v48, %v661_v44 }
 0x22a   : > { %1582 = vmatprep.subr.bf16.mxu1 %v1184_v33  ;;  %v681_v53 = vpack.c.bf16 %v656_v51, %v653_v46 }
 0x22b   : > { %698 = vst.msk [vmem:[#allocation3 + $0x78] sm:$0xff] %vm368_vm0, %v682_v52 }
 0x22c   : > { %697 = vst.msk [vmem:[#allocation3 + $0x70] sm:$0xff] %vm368_vm0, %v681_v53 }
 0x22d   : > { %1583 = vmatpush3.bf16.msra.mxu1 %v1176_v36 }
 0x22e   : > { %1584 = vmatprep.subr.bf16.mxu1 %v1185_v40  ;;  %v1179_v55 = vld [vmem:[#allocation3 + $0x20] sm:$0xff]  ;;  %v1188_v56 = vld [vmem:[#allocation3 + $0x68] sm:$0xff] }
 0x22f   : > { %v1187_v54 = vld [vmem:[#allocation3 + $0x60] sm:$0xff] }
 0x231   : > { %1585 = vmatpush3.bf16.msra.mxu1 %v1177_v41 }
 0x232   : > { %1586 = vmatprep.subr.bf16.mxu1 %v1186_v43  ;;  %v1190_v60 = vld [vmem:[#allocation3 + $0x78] sm:$0xff] }
 0x233   : > { %v1189_v58 = vld [vmem:[#allocation3 + $0x70] sm:$0xff] }
 0x235   : > { %1587 = vmatpush3.bf16.msra.mxu1 %v1178_v50 }
 0x236   : > { %1588 = vmatprep.subr.bf16.mxu1 %v1187_v54 }
 0x239   : > { %1589 = vmatpush3.bf16.msra.mxu1 %v1179_v55 }
 0x23a   : > { %1590 = vmatprep.subr.bf16.mxu1 %v1188_v56 }
 0x23d   : > { %1591 = vmatpush3.bf16.msra.mxu1 %v1180_v57 }
 0x23e   : > { %1592 = vmatprep.subr.bf16.mxu1 %v1189_v58 }
 0x241   : > { %1593 = vmatpush3.bf16.msra.mxu1 %v1181_v59 }
 0x242   : > { %1594 = vmatprep.subr.bf16.mxu1 %v1190_v60 }
 0x245   : > { %1595 = vmatpush3.bf16.msra.mxu1 %v1182_v29 }
 0x2bf   : > { %v2474_v61 = vpop.f32.mrb[4].mxu0 }
 0x2c0   : > { %v2476_v62 = vpop.f32.mrb[5].mxu0 }
 0x2c1   : > { %v967_v63 = vmax.f32 %v2474_v61, %v2476_v62 }
 0x2c3   : > { %968 = vmax.xlane.f32.xlu1 %v967_v63  ;;  %v2480_v0 = vpop.f32.mrb[6].mxu0 }
 0x2c4   : > { %v2482_v1 = vpop.f32.mrb[7].mxu0 }
 0x2c5   : > { %v970_v2 = vmax.f32 %v2480_v0, %v2482_v1 }
 0x2c7   : > { %971 = vmax.xlane.f32.xlu0 %v970_v2  ;;  %v2486_v3 = vpop.f32.mrb[8].mxu0 }
 0x2c8   : > { %v2488_v5 = vpop.f32.mrb[9].mxu0 }
 0x2c9   : > { %v973_v6 = vmax.f32 %v2486_v3, %v2488_v5 }
 0x2cb   : > { %974 = vmax.xlane.f32.xlu0 %v973_v6  ;;  %v2492_v7 = vpop.f32.mrb[10].mxu0 }
 0x2cc   : > { %v2494_v8 = vpop.f32.mrb[11].mxu0 }
 0x2cd   : > { %v976_v10 = vmax.f32 %v2492_v7, %v2494_v8 }
 0x2cf   : > { %977 = vmax.xlane.f32.xlu0 %v976_v10  ;;  %v2498_v11 = vpop.f32.mrb[12].mxu0 }
 0x2d0   : > { %v2500_v12 = vpop.f32.mrb[13].mxu0 }
 0x2d1   : > { %v979_v14 = vmax.f32 %v2498_v11, %v2500_v12 }
 0x2d3   : > { %980 = vmax.xlane.f32.xlu0 %v979_v14  ;;  %v2504_v4 = vpop.f32.mrb[14].mxu0 }
 0x2d4   : > { %v2506_v9 = vpop.f32.mrb[15].mxu0 }
 0x2d5   : > { %v982_v13 = vmax.f32 %v2504_v4, %v2506_v9 }
 0x2d7   : > { %983 = vmax.xlane.f32.xlu0 %v982_v13  ;;  %v2510_v15 = vpop.f32.mrb[16].mxu0 }
 0x2d8   : > { %v2512_v16 = vpop.f32.mrb[17].mxu0 }
 0x2d9   : > { %v985_v17 = vmax.f32 %v2510_v15, %v2512_v16 }
 0x2db   : > { %986 = vmax.xlane.f32.xlu0 %v985_v17  ;;  %v2516_v18 = vpop.f32.mrb[18].mxu0 }
 0x2dc   : > { %v2518_v19 = vpop.f32.mrb[19].mxu0 }
 0x2dd   : > { %v988_v20 = vmax.f32 %v2516_v18, %v2518_v19 }
 0x2df   : > { %989 = vmax.xlane.f32.xlu0 %v988_v20  ;;  %v2522_v21 = vpop.f32.mrb[20].mxu0 }
 0x2e0   : > { %v2524_v22 = vpop.f32.mrb[21].mxu0 }
 0x2e1   : > { %v991_v23 = vmax.f32 %v2522_v21, %v2524_v22 }
 0x2e3   : > { %992 = vmax.xlane.f32.xlu0 %v991_v23  ;;  %v2528_v24 = vpop.f32.mrb[22].mxu0 }
 0x2e4   : > { %v2530_v25 = vpop.f32.mrb[23].mxu0 }
 0x2e5   : > { %v994_v26 = vmax.f32 %v2528_v24, %v2530_v25 }
 0x2e7   : > { %995 = vmax.xlane.f32.xlu0 %v994_v26  ;;  %v2534_v27 = vpop.f32.mrb[24].mxu0 }
 0x2e8   : > { %v2536_v28 = vpop.f32.mrb[25].mxu0 }
 0x2e9   : > { %v997_v30 = vmax.f32 %v2534_v27, %v2536_v28 }
 0x2eb   : > { %998 = vmax.xlane.f32.xlu0 %v997_v30  ;;  %v2540_v31 = vpop.f32.mrb[26].mxu0 }
 0x2ec   : > { %v2542_v32 = vpop.f32.mrb[27].mxu0 }
 0x2ed   : > { %v1000_v33 = vmax.f32 %v2540_v31, %v2542_v32 }
 0x2ef   : > { %1001 = vmax.xlane.f32.xlu0 %v1000_v33  ;;  %v2546_v34 = vpop.f32.mrb[28].mxu0 }
 0x2f0   : > { %v2548_v35 = vpop.f32.mrb[29].mxu0 }
 0x2f1   : > { %v1003_v36 = vmax.f32 %v2546_v34, %v2548_v35 }
 0x2f3   : > { %1004 = vmax.xlane.f32.xlu0 %v1003_v36  ;;  %v2552_v37 = vpop.f32.mrb[30].mxu0 }
 0x2f4   : > { %v2554_v38 = vpop.f32.mrb[31].mxu0 }
 0x2f5   : > { %v1006_v39 = vmax.f32 %v2552_v37, %v2554_v38 }
 0x2f7   : > { %1007 = vmax.xlane.f32.xlu0 %v1006_v39  ;;  %v2558_v40 = vpop.f32.mrb[32].mxu0 }
 0x2f8   : > { %v2560_v41 = vpop.f32.mrb[33].mxu0 }
 0x2f9   : > { %v1009_v42 = vmax.f32 %v2558_v40, %v2560_v41 }
 0x2fb   : > { %1010 = vmax.xlane.f32.xlu0 %v1009_v42  ;;  %v2564_v43 = vpop.f32.mrb[34].mxu0 }
 0x2fc   : > { %v2566_v44 = vpop.f32.mrb[35].mxu0 }
 0x2fd   : > { %v1012_v45 = vmax.f32 %v2564_v43, %v2566_v44 }
 0x2ff   : > { %1013 = vmax.xlane.f32.xlu0 %v1012_v45 }
 0x350   : > { %v969_v46 = vpop.xlane.xlu1 %968 }
 0x351   : > { %v1015_v47 = vsub.f32 %v2474_v61, %v969_v46  ;;  %v1016_v48 = vsub.f32 %v2476_v62, %v969_v46 }
 0x353   : > { %v1047_v49 = vmul.f32 1.442695, %v1015_v47  ;;  %v1049_v50 = vmul.f32 1.442695, %v1016_v48 }
 0x354   : > { %v972_v51 = vpop.xlane.xlu0 %971 }
 0x355   : > { %1806 = vpow2.f32 %v1047_v49  ;;  %v1017_v52 = vsub.f32 %v2480_v0, %v972_v51  ;;  %v1018_v53 = vsub.f32 %v2482_v1, %v972_v51 }
 0x356   : > { %1808 = vpow2.f32 %v1049_v50 }
 0x357   : > { %v1051_v54 = vmul.f32 1.442695, %v1017_v52  ;;  %v1053_v55 = vmul.f32 1.442695, %v1018_v53 }
 0x358   : > { %v975_v56 = vpop.xlane.xlu0 %974 }
 0x359   : > { %1810 = vpow2.f32 %v1051_v54  ;;  %v1019_v57 = vsub.f32 %v2486_v3, %v975_v56  ;;  %v1020_v58 = vsub.f32 %v2488_v5, %v975_v56 }
 0x35a   : > { %1812 = vpow2.f32 %v1053_v55 }
 0x35b   : > { %v1055_v59 = vmul.f32 1.442695, %v1019_v57  ;;  %v1057_v60 = vmul.f32 1.442695, %v1020_v58 }
 0x35c   : > { %v978_v29 = vpop.xlane.xlu0 %977 }
 0x35d   : > { %1814 = vpow2.f32 %v1055_v59  ;;  %v1021_v61 = vsub.f32 %v2492_v7, %v978_v29  ;;  %v1022_v62 = vsub.f32 %v2494_v8, %v978_v29 }
 0x35e   : > { %1816 = vpow2.f32 %v1057_v60 }
 0x35f   : > { %v1807_v63 = vpop.eup %1806  ;;  %v1059_v0 = vmul.f32 1.442695, %v1021_v61  ;;  %v1061_v1 = vmul.f32 1.442695, %v1022_v62 }
 0x360   : > { %v1809_v2 = vpop.eup %1808  ;;  %v981_v6 = vpop.xlane.xlu0 %980 }
 0x361   : > { %1818 = vpow2.f32 %v1059_v0  ;;  %v1023_v3 = vsub.f32 %v2498_v11, %v981_v6  ;;  %v1024_v5 = vsub.f32 %v2500_v12, %v981_v6  ;;  %v1111_v10 = vadd.f32 %v1809_v2, %v1807_v63 }
 0x362   : > { %1820 = vpow2.f32 %v1061_v1 }
 0x363   : > { %v1811_v14 = vpop.eup %1810  ;;  %v1063_v13 = vmul.f32 1.442695, %v1023_v3  ;;  %v1065_v17 = vmul.f32 1.442695, %v1024_v5  ;;  %1112 = vadd.xlane.f32.xlu0 %v1111_v10 }
 0x364   : > { %v1813_v7 = vpop.eup %1812  ;;  %v984_v20 = vpop.xlane.xlu0 %983  ;;  %v1159_v8 = vpack.c.bf16 %v1811_v14, %v1807_v63 }
 0x365   : > { %1822 = vpow2.f32 %v1063_v13  ;;  %v1025_v23 = vsub.f32 %v2504_v4, %v984_v20  ;;  %v1026_v26 = vsub.f32 %v2506_v9, %v984_v20  ;;  %v1160_v30 = vpack.c.bf16 %v1813_v7, %v1809_v2 }
 0x366   : > { %1824 = vpow2.f32 %v1065_v17  ;;  %v1114_v33 = vadd.f32 %v1813_v7, %v1811_v14 }
 0x367   : > { %v1815_v11 = vpop.eup %1814  ;;  %v1067_v36 = vmul.f32 1.442695, %v1025_v23  ;;  %v1069_v12 = vmul.f32 1.442695, %v1026_v26  ;;  %1223 = vmatprep.mubr.bf16.mxu1 %v1160_v30 }
 0x368   : > { %v1817_v39 = vpop.eup %1816  ;;  %1115 = vadd.xlane.f32.xlu0 %v1114_v33  ;;  %1224 = vmatmul.mubr.bf16.vlgmr.msra.gmra.mrb[32].mxu1 %v1159_v8  ;;  %v987_v42 = vpop.xlane.xlu0 %986 }
 0x369   : > { %1826 = vpow2.f32 %v1067_v36  ;;  %v1027_v45 = vsub.f32 %v2510_v15, %v987_v42  ;;  %v1028_v46 = vsub.f32 %v2512_v16, %v987_v42  ;;  %v1117_v47 = vadd.f32 %v1817_v39, %v1815_v11 }
 0x36a   : > { %1828 = vpow2.f32 %v1069_v12 }
 0x36b   : > { %v1819_v4 = vpop.eup %1818  ;;  %v1071_v9 = vmul.f32 1.442695, %v1027_v45  ;;  %v1073_v48 = vmul.f32 1.442695, %v1028_v46 }
 0x36c   : > { %v1821_v49 = vpop.eup %1820  ;;  %1118 = vadd.xlane.f32.xlu0 %v1117_v47  ;;  %v990_v50 = vpop.xlane.xlu0 %989  ;;  %v1161_v51 = vpack.c.bf16 %v1819_v4, %v1815_v11 }
 0x36d   : > { %1830 = vpow2.f32 %v1071_v9  ;;  %v1029_v52 = vsub.f32 %v2516_v18, %v990_v50  ;;  %v1030_v53 = vsub.f32 %v2518_v19, %v990_v50  ;;  %v1120_v54 = vadd.f32 %v1821_v49, %v1819_v4 }
 0x36e   : > { %1832 = vpow2.f32 %v1073_v48  ;;  %v1162_v55 = vpack.c.bf16 %v1821_v49, %v1817_v39 }
 0x36f   : > { %v1823_v15 = vpop.eup %1822  ;;  %v1075_v56 = vmul.f32 1.442695, %v1029_v52  ;;  %v1077_v16 = vmul.f32 1.442695, %v1030_v53  ;;  %1121 = vadd.xlane.f32.xlu1 %v1120_v54 }
 0x370   : > { %v1825_v57 = vpop.eup %1824  ;;  %1231 = vmatprep.mubr.bf16.mxu1 %v1162_v55  ;;  %v993_v58 = vpop.xlane.xlu0 %992 }
 0x371   : > { %1834 = vpow2.f32 %v1075_v56  ;;  %1232 = vmatmul.mubr.bf16.gmra.mrb[36].mxu1 %v1161_v51  ;;  %v1031_v59 = vsub.f32 %v2522_v21, %v993_v58  ;;  %v1032_v60 = vsub.f32 %v2524_v22, %v993_v58  ;;  %v1123_v29 = vadd.f32 %v1825_v57, %v1823_v15 }
 0x372   : > { %1836 = vpow2.f32 %v1077_v16 }
 0x373   : > { %v1827_v18 = vpop.eup %1826  ;;  %v1079_v19 = vmul.f32 1.442695, %v1031_v59  ;;  %v1081_v61 = vmul.f32 1.442695, %v1032_v60  ;;  %1124 = vadd.xlane.f32.xlu0 %v1123_v29 }
 0x374   : > { %v1829_v62 = vpop.eup %1828  ;;  %v996_v63 = vpop.xlane.xlu0 %995  ;;  %v1163_v0 = vpack.c.bf16 %v1827_v18, %v1823_v15 }
 0x375   : > { %1838 = vpow2.f32 %v1079_v19  ;;  %v1033_v1 = vsub.f32 %v2528_v24, %v996_v63  ;;  %v1034_v2 = vsub.f32 %v2530_v25, %v996_v63  ;;  %v1126_v6 = vadd.f32 %v1829_v62, %v1827_v18 }
 0x376   : > { %1840 = vpow2.f32 %v1081_v61  ;;  %v1164_v3 = vpack.c.bf16 %v1829_v62, %v1825_v57 }
 0x377   : > { %v1831_v21 = vpop.eup %1830  ;;  %v1083_v5 = vmul.f32 1.442695, %v1033_v1  ;;  %v1085_v22 = vmul.f32 1.442695, %v1034_v2  ;;  %1127 = vadd.xlane.f32.xlu1 %v1126_v6 }
 0x378   : > { %v1833_v10 = vpop.eup %1832  ;;  %1239 = vmatprep.mubr.bf16.mxu1 %v1164_v3  ;;  %v999_v14 = vpop.xlane.xlu0 %998 }
 0x379   : > { %1842 = vpow2.f32 %v1083_v5  ;;  %1240 = vmatmul.mubr.bf16.gmra.mrb[40].mxu1 %v1163_v0  ;;  %v1035_v13 = vsub.f32 %v2534_v27, %v999_v14  ;;  %v1036_v17 = vsub.f32 %v2536_v28, %v999_v14  ;;  %v1129_v7 = vadd.f32 %v1833_v10, %v1831_v21 }
 0x37a   : > { %1844 = vpow2.f32 %v1085_v22 }
 0x37b   : > { %v1835_v24 = vpop.eup %1834  ;;  %v1087_v25 = vmul.f32 1.442695, %v1035_v13  ;;  %v1089_v20 = vmul.f32 1.442695, %v1036_v17  ;;  %1130 = vadd.xlane.f32.xlu0 %v1129_v7 }
 0x37c   : > { %v1837_v8 = vpop.eup %1836  ;;  %v1002_v23 = vpop.xlane.xlu0 %1001  ;;  %v1165_v26 = vpack.c.bf16 %v1835_v24, %v1831_v21 }
 0x37d   : > { %1846 = vpow2.f32 %v1087_v25  ;;  %v1037_v30 = vsub.f32 %v2540_v31, %v1002_v23  ;;  %v1038_v33 = vsub.f32 %v2542_v32, %v1002_v23  ;;  %v1132_v11 = vadd.f32 %v1837_v8, %v1835_v24 }
 0x37e   : > { %1848 = vpow2.f32 %v1089_v20  ;;  %v1166_v36 = vpack.c.bf16 %v1837_v8, %v1833_v10 }
 0x37f   : > { %v1839_v27 = vpop.eup %1838  ;;  %v1091_v12 = vmul.f32 1.442695, %v1037_v30  ;;  %v1093_v28 = vmul.f32 1.442695, %v1038_v33  ;;  %1133 = vadd.xlane.f32.xlu1 %v1132_v11 }
 0x380   : > { %v1841_v39 = vpop.eup %1840  ;;  %1247 = vmatprep.mubr.bf16.mxu1 %v1166_v36  ;;  %v1005_v42 = vpop.xlane.xlu0 %1004  ;;  %v2608_v36 = vstv %s1320_s15  ;;  %s1932_s15 = scalar_lea.vmem %s2682_s30, 2048 }
 0x381   : > { %1850 = vpow2.f32 %v1091_v12  ;;  %1248 = vmatmul.mubr.bf16.gmra.mrb[44].mxu1 %v1165_v26  ;;  %v1039_v45 = vsub.f32 %v2546_v34, %v1005_v42  ;;  %v1040_v46 = vsub.f32 %v2548_v35, %v1005_v42  ;;  %v1135_v47 = vadd.f32 %v1841_v39, %v1839_v27  ;;  %v702_v42 = vld [vmem:[%s2606_s11] sm:$0xff]  ;;  %p1933_p7 = scmp.ne.s32.totalorder %s2682_s30, %s1932_s15 }
 0x382   : > { %1852 = vpow2.f32 %v1093_v28 }
 0x383   : > { %v1843_v31 = vpop.eup %1842  ;;  %v1095_v32 = vmul.f32 1.442695, %v1039_v45  ;;  %v1097_v4 = vmul.f32 1.442695, %v1040_v46  ;;  %1136 = vadd.xlane.f32.xlu0 %v1135_v47  ;;  %p1934_p2 = pnand %p1933_p7, %p2771_p12 }
 0x384   : > { %v1845_v9 = vpop.eup %1844  ;;  %v1008_v48 = vpop.xlane.xlu0 %1007  ;;  %v1167_v49 = vpack.c.bf16 %v1843_v31, %v1839_v27 }
 0x385   : > { %1854 = vpow2.f32 %v1095_v32  ;;  %v1041_v50 = vsub.f32 %v2552_v37, %v1008_v48  ;;  %v1042_v51 = vsub.f32 %v2554_v38, %v1008_v48  ;;  %v1138_v52 = vadd.f32 %v1845_v9, %v1843_v31  ;;  %v703_v31 = vld [vmem:[%s2606_s11 + $0x8] sm:$0xff]  ;;  %p1935_p4 = pneg %p1934_p2 }
 0x386   : > { %1856 = vpow2.f32 %v1097_v4  ;;  %v1168_v53 = vpack.c.bf16 %v1845_v9, %v1841_v39 }
 0x387   : > { %v1847_v34 = vpop.eup %1846  ;;  %v1099_v54 = vmul.f32 1.442695, %v1041_v50  ;;  %v1101_v35 = vmul.f32 1.442695, %v1042_v51  ;;  %1139 = vadd.xlane.f32.xlu1 %v1138_v52 }
 0x388   : > { %v1849_v55 = vpop.eup %1848  ;;  %1255 = vmatprep.mubr.bf16.mxu1 %v1168_v53  ;;  %v1011_v15 = vpop.xlane.xlu0 %1010 }
 0x389   : > { %1858 = vpow2.f32 %v1099_v54  ;;  %1256 = vmatmul.mubr.bf16.gmra.mrb[48].mxu1 %v1167_v49  ;;  %v1043_v56 = vsub.f32 %v2558_v40, %v1011_v15  ;;  %v1044_v16 = vsub.f32 %v2560_v41, %v1011_v15  ;;  %v1141_v57 = vadd.f32 %v1849_v55, %v1847_v34  ;;  %v704_v15 = vld [vmem:[%s2606_s11 + $0x10] sm:$0xff] }
 0x38a   : > { %1860 = vpow2.f32 %v1101_v35 }
 0x38b   : > { %v1851_v37 = vpop.eup %1850  ;;  %v1103_v38 = vmul.f32 1.442695, %v1043_v56  ;;  %v1105_v58 = vmul.f32 1.442695, %v1044_v16  ;;  %1142 = vadd.xlane.f32.xlu0 %v1141_v57 }
 0x38c   : > { %v1853_v59 = vpop.eup %1852  ;;  %v1014_v60 = vpop.xlane.xlu0 %1013  ;;  %v1169_v29 = vpack.c.bf16 %v1851_v37, %v1847_v34 }
 0x38d   : > { %1862 = vpow2.f32 %v1103_v38  ;;  %v1045_v18 = vsub.f32 %v2564_v43, %v1014_v60  ;;  %v1046_v19 = vsub.f32 %v2566_v44, %v1014_v60  ;;  %v1144_v61 = vadd.f32 %v1853_v59, %v1851_v37  ;;  %v705_v37 = vld [vmem:[%s2606_s11 + $0x18] sm:$0xff] }
 0x38e   : > { %1864 = vpow2.f32 %v1105_v58  ;;  %v1170_v62 = vpack.c.bf16 %v1853_v59, %v1849_v55 }
 0x38f   : > { %v1855_v40 = vpop.eup %1854  ;;  %v1107_v63 = vmul.f32 1.442695, %v1045_v18  ;;  %v1109_v41 = vmul.f32 1.442695, %v1046_v19  ;;  %1145 = vadd.xlane.f32.xlu1 %v1144_v61 }
 0x390   : > { %v1857_v0 = vpop.eup %1856  ;;  %1263 = vmatprep.mubr.bf16.mxu1 %v1170_v62 }
 0x391   : > { %1866 = vpow2.f32 %v1107_v63  ;;  %1264 = vmatmul.mubr.bf16.gmra.mrb[52].mxu1 %v1169_v29  ;;  %v1147_v1 = vadd.f32 %v1857_v0, %v1855_v40 }
 0x392   : > { %1868 = vpow2.f32 %v1109_v41 }
 0x393   : > { %v1859_v2 = vpop.eup %1858  ;;  %1148 = vadd.xlane.f32.xlu0 %v1147_v1  ;;  %v706_v1 = vld [vmem:[%s2606_s11 + $0x20] sm:$0xff] }
 0x394   : > { %v1861_v6 = vpop.eup %1860  ;;  %v1171_v3 = vpack.c.bf16 %v1859_v2, %v1855_v40 }
 0x395   : > { %v1150_v43 = vadd.f32 %v1861_v6, %v1859_v2  ;;  %v1172_v21 = vpack.c.bf16 %v1861_v6, %v1857_v0 }
 0x397   : > { %v1863_v44 = vpop.eup %1862  ;;  %1151 = vadd.xlane.f32.xlu1 %v1150_v43  ;;  %1271 = vmatprep.mubr.bf16.mxu1 %v1172_v21  ;;  %v707_v43 = vld [vmem:[%s2606_s11 + $0x28] sm:$0xff] }
 0x398   : > { %v1865_v5 = vpop.eup %1864 }
 0x399   : > { %1272 = vmatmul.mubr.bf16.gmra.mrb[56].mxu1 %v1171_v3  ;;  %v1153_v22 = vadd.f32 %v1865_v5, %v1863_v44 }
 0x39b   : > { %v1867_v10 = vpop.eup %1866  ;;  %1154 = vadd.xlane.f32.xlu0 %v1153_v22 }
 0x39c   : > { %v1869_v14 = vpop.eup %1868  ;;  %v1173_v13 = vpack.c.bf16 %v1867_v10, %v1863_v44 }
 0x39d   : > { %v1156_v17 = vadd.f32 %v1869_v14, %v1867_v10  ;;  %v1174_v7 = vpack.c.bf16 %v1869_v14, %v1865_v5 }
 0x39f   : > { %1157 = vadd.xlane.f32.xlu1 %v1156_v17  ;;  %1279 = vmatprep.mubr.bf16.mxu1 %v1174_v7 }
 0x3a1   : > { %1280 = vmatmul.mubr.bf16.gmra.mrb[60].mxu1 %v1173_v13 }
 0x3f0   : > { %v1113_v24 = vpop.xlane.xlu0 %1112 }
 0x3f1   : > { %1870 = vrcp.f32 %v1113_v24 }
 0x3f5   : > { %v1116_v25 = vpop.xlane.xlu0 %1115 }
 0x3f6   : > { %1872 = vrcp.f32 %v1116_v25 }
 0x3f9   : > { %v1119_v20 = vpop.xlane.xlu0 %1118 }
 0x3fa   : > { %1874 = vrcp.f32 %v1119_v20 }
 0x3fb   : > { %v1871_v11 = vpop.eup %1870 }
 0x3fc   : > { %v1122_v23 = vpop.xlane.xlu1 %1121 }
 0x3fd   : > { %1876 = vrcp.f32 %v1122_v23  ;;  %v708_v23 = vld [vmem:[%s2606_s11 + $0x30] sm:$0xff] }
 0x400   : > { %v1873_v39 = vpop.eup %1872  ;;  %v1125_v47 = vpop.xlane.xlu0 %1124 }
 0x401   : > { %1878 = vrcp.f32 %v1125_v47 }
 0x404   : > { %v1128_v9 = vpop.xlane.xlu1 %1127  ;;  %v1875_v53 = vpop.eup %1874 }
 0x405   : > { %1880 = vrcp.f32 %v1128_v9 }
 0x407   : > { %v1877_v55 = vpop.eup %1876 }
 0x408   : > { %v1131_v56 = vpop.xlane.xlu0 %1130 }
 0x409   : > { %1882 = vrcp.f32 %v1131_v56 }
 0x40b   : > { %v1879_v62 = vpop.eup %1878 }
 0x40c   : > { %v1134_v38 = vpop.xlane.xlu1 %1133 }
 0x40d   : > { %1884 = vrcp.f32 %v1134_v38 }
 0x40f   : > { %v1881_v0 = vpop.eup %1880 }
 0x410   : > { %v1137_v2 = vpop.xlane.xlu0 %1136 }
 0x411   : > { %1886 = vrcp.f32 %v1137_v2 }
 0x413   : > { %v1883_v7 = vpop.eup %1882 }
 0x414   : > { %v1140_v21 = vpop.xlane.xlu1 %1139 }
 0x415   : > { %1888 = vrcp.f32 %v1140_v21 }
 0x43b   : > { %v1596_v8 = vpop.f32.mrb[32].mxu1 }
 0x43c   : > { %v1597_v26 = vpop.f32.mrb[33].mxu1 }
 0x43d   : > { %v1598_v30 = vadd.f32 %v1597_v26, %v1596_v8  ;;  %v1599_v33 = vpop.f32.mrb[34].mxu1  ;;  %v1885_v8 = vpop.eup %1884 }
 0x43e   : > { %v1600_v27 = vpop.f32.mrb[35].mxu1  ;;  %v1143_v26 = vpop.xlane.xlu0 %1142 }
 0x43f   : > { %v1304_v12 = vmul.f32 %v1871_v11, %v1598_v30  ;;  %v1601_v28 = vadd.f32 %v1600_v27, %v1599_v33  ;;  %v709_v11 = vld [vmem:[%s2606_s11 + $0x38] sm:$0xff]  ;;  %v1146_v27 = vpop.xlane.xlu1 %1145  ;;  %1890 = vrcp.f32 %v1143_v26 }
 0x440   : > { %1892 = vrcp.f32 %v1146_v27 }
 0x441   : > { %v1322_v45 = vmul.f32 %v2608_v36, %v1304_v12  ;;  %v1305_v46 = vmul.f32 %v1873_v39, %v1601_v28 }
 0x443   : > { %v1338_v32 = vadd.f32 %v1322_v45, %v702_v42  ;;  %v1323_v4 = vmul.f32 %v2608_v36, %v1305_v46 }
 0x444   : > { %v1602_v48 = vpop.f32.mrb[36].mxu1 }
 0x445   : > { %1355 = vst.msk [vmem:[%s2616_s18] sm:$0xff] %vm368_vm0, %v1338_v32  ;;  %v1339_v49 = vadd.f32 %v1323_v4, %v703_v31  ;;  %v1603_v50 = vpop.f32.mrb[37].mxu1  ;;  %v1887_v31 = vpop.eup %1886 }
 0x446   : > { %v1604_v51 = vadd.f32 %v1603_v50, %v1602_v48  ;;  %v1605_v52 = vpop.f32.mrb[38].mxu1  ;;  %v1889_v48 = vpop.eup %1888 }
 0x447   : > { %1356 = vst.msk [vmem:[%s2616_s18 + $0x8] sm:$0xff] %vm368_vm0, %v1339_v49  ;;  %v1606_v34 = vpop.f32.mrb[39].mxu1  ;;  %v710_v49 = vld [vmem:[%s2606_s11 + $0x40] sm:$0xff]  ;;  %v1149_v50 = vpop.xlane.xlu0 %1148 }
 0x448   : > { %v1306_v54 = vmul.f32 %v1875_v53, %v1604_v51  ;;  %v1607_v35 = vadd.f32 %v1606_v34, %v1605_v52  ;;  %v711_v53 = vld [vmem:[%s2606_s11 + $0x48] sm:$0xff]  ;;  %v1152_v34 = vpop.xlane.xlu1 %1151  ;;  %1894 = vrcp.f32 %v1149_v50 }
 0x449   : > { %1896 = vrcp.f32 %v1152_v34 }
 0x44a   : > { %v1324_v16 = vmul.f32 %v2608_v36, %v1306_v54  ;;  %v1307_v57 = vmul.f32 %v1877_v55, %v1607_v35 }
 0x44c   : > { %v1340_v58 = vadd.f32 %v1324_v16, %v704_v15  ;;  %v1325_v59 = vmul.f32 %v2608_v36, %v1307_v57  ;;  %v1608_v60 = vpop.f32.mrb[40].mxu1 }
 0x44d   : > { %v1609_v29 = vpop.f32.mrb[41].mxu1 }
 0x44e   : > { %1357 = vst.msk [vmem:[%s2616_s18 + $0x10] sm:$0xff] %vm368_vm0, %v1340_v58  ;;  %v1341_v18 = vadd.f32 %v1325_v59, %v705_v37  ;;  %v1610_v19 = vadd.f32 %v1609_v29, %v1608_v60  ;;  %v1611_v61 = vpop.f32.mrb[42].mxu1  ;;  %v1891_v37 = vpop.eup %1890  ;;  %v712_v29 = vld [vmem:[%s2606_s11 + $0x50] sm:$0xff] }
 0x44f   : > { %v1612_v40 = vpop.f32.mrb[43].mxu1  ;;  %v1893_v60 = vpop.eup %1892 }
 0x450   : > { %1358 = vst.msk [vmem:[%s2616_s18 + $0x18] sm:$0xff] %vm368_vm0, %v1341_v18  ;;  %v1308_v63 = vmul.f32 %v1879_v62, %v1610_v19  ;;  %v1613_v41 = vadd.f32 %v1612_v40, %v1611_v61  ;;  %v1155_v18 = vpop.xlane.xlu0 %1154  ;;  %v713_v62 = vld [vmem:[%s2606_s11 + $0x58] sm:$0xff]  ;;  %v1158_v40 = vpop.xlane.xlu1 %1157 }
 0x451   : > { %1898 = vrcp.f32 %v1155_v18 }
 0x452   : > { %v1326_v6 = vmul.f32 %v2608_v36, %v1308_v63  ;;  %v1309_v3 = vmul.f32 %v1881_v0, %v1613_v41  ;;  %1900 = vrcp.f32 %v1158_v40 }
 0x454   : > { %v1342_v44 = vadd.f32 %v1326_v6, %v706_v1  ;;  %v1327_v5 = vmul.f32 %v2608_v36, %v1309_v3  ;;  %v1614_v22 = vpop.f32.mrb[44].mxu1 }
 0x455   : > { %v1615_v10 = vpop.f32.mrb[45].mxu1 }
 0x456   : > { %1359 = vst.msk [vmem:[%s2616_s18 + $0x20] sm:$0xff] %vm368_vm0, %v1342_v44  ;;  %v1343_v14 = vadd.f32 %v1327_v5, %v707_v43  ;;  %v1616_v13 = vadd.f32 %v1615_v10, %v1614_v22  ;;  %v1617_v17 = vpop.f32.mrb[46].mxu1  ;;  %v1895_v43 = vpop.eup %1894  ;;  %v714_v10 = vld [vmem:[%s2606_s11 + $0x60] sm:$0xff] }
 0x457   : > { %v1618_v24 = vpop.f32.mrb[47].mxu1  ;;  %v1897_v22 = vpop.eup %1896 }
 0x458   : > { %1360 = vst.msk [vmem:[%s2616_s18 + $0x28] sm:$0xff] %vm368_vm0, %v1343_v14  ;;  %v1310_v25 = vmul.f32 %v1883_v7, %v1616_v13  ;;  %v1619_v20 = vadd.f32 %v1618_v24, %v1617_v17  ;;  %v715_v17 = vld [vmem:[%s2606_s11 + $0x68] sm:$0xff] }
 0x45a   : > { %v1328_v30 = vmul.f32 %v2608_v36, %v1310_v25  ;;  %v1311_v33 = vmul.f32 %v1885_v8, %v1619_v20 }
 0x45c   : > { %v1344_v12 = vadd.f32 %v1328_v30, %v708_v23  ;;  %v1329_v28 = vmul.f32 %v2608_v36, %v1311_v33  ;;  %v1620_v39 = vpop.f32.mrb[48].mxu1  ;;  %v1899_v30 = vpop.eup %1898 }
 0x45d   : > { %v1621_v42 = vpop.f32.mrb[49].mxu1 }
 0x45e   : > { %1361 = vst.msk [vmem:[%s2616_s18 + $0x30] sm:$0xff] %vm368_vm0, %v1344_v12  ;;  %v1345_v45 = vadd.f32 %v1329_v28, %v709_v11  ;;  %v1622_v46 = vadd.f32 %v1621_v42, %v1620_v39  ;;  %v1623_v47 = vpop.f32.mrb[50].mxu1  ;;  %v1901_v12 = vpop.eup %1900  ;;  %v716_v28 = vld [vmem:[%s2606_s11 + $0x70] sm:$0xff] }
 0x45f   : > { %v1624_v32 = vpop.f32.mrb[51].mxu1 }
 0x460   : > { %1362 = vst.msk [vmem:[%s2616_s18 + $0x38] sm:$0xff] %vm368_vm0, %v1345_v45  ;;  %v1312_v4 = vmul.f32 %v1887_v31, %v1622_v46  ;;  %v1625_v9 = vadd.f32 %v1624_v32, %v1623_v47  ;;  %v717_v45 = vld [vmem:[%s2606_s11 + $0x78] sm:$0xff]  ;;  %s2061_s11 = smov [#allocation8]  }
 0x461   : > { %s1936_s17 = sshll.u32 %s2061_s11, 4  ;;  %s1937_s17 = int_to_ptr.vmem [resolvable:$false] %s1936_s17 }
 0x462   : > { %v1330_v51 = vmul.f32 %v2608_v36, %v1312_v4  ;;  %v1313_v52 = vmul.f32 %v1889_v48, %v1625_v9  ;;  %s1938_s13 = scalar_lea.vmem %s1937_s17, 4096  ;;  %p1939_p0 = scmp.lt.s32.totalorder %s2682_s30, %s1937_s17 }
 0x463   : > { %p1940_p1 = scmp.lt.s32.totalorder %s1938_s13, %s1932_s15 }
 0x464   : > { %v1346_v54 = vadd.f32 %v1330_v51, %v710_v49  ;;  %v1331_v35 = vmul.f32 %v2608_v36, %v1313_v52  ;;  %v1626_v55 = vpop.f32.mrb[52].mxu1 }
 0x465   : > { %v1627_v15 = vpop.f32.mrb[53].mxu1  ;;  %p1941_p6 = por %p1940_p1, %p1939_p0 }
 0x466   : > { %1363 = vst.msk [vmem:[%s2616_s18 + $0x40] sm:$0xff] %vm368_vm0, %v1346_v54  ;;  %v1347_v56 = vadd.f32 %v1331_v35, %v711_v53  ;;  %v1628_v16 = vadd.f32 %v1627_v15, %v1626_v55  ;;  %v1629_v57 = vpop.f32.mrb[54].mxu1 }
 0x467   : > { %v1630_v38 = vpop.f32.mrb[55].mxu1  ;;  %p1942_p9 = pnand %p1941_p6, %p1935_p4 }
 0x468   : > { %1364 = vst.msk [vmem:[%s2616_s18 + $0x48] sm:$0xff] %vm368_vm0, %v1347_v56  ;;  %v1314_v58 = vmul.f32 %v1891_v37, %v1628_v16  ;;  %v1631_v59 = vadd.f32 %v1630_v38, %v1629_v57 }
 0x46a   : > { %v1332_v19 = vmul.f32 %v2608_v36, %v1314_v58  ;;  %v1315_v61 = vmul.f32 %v1893_v60, %v1631_v59 }
 0x46c   : > { %v1348_v63 = vadd.f32 %v1332_v19, %v712_v29  ;;  %v1333_v41 = vmul.f32 %v2608_v36, %v1315_v61  ;;  %v1632_v0 = vpop.f32.mrb[56].mxu1 }
 0x46d   : > { %v1633_v1 = vpop.f32.mrb[57].mxu1 }
 0x46e   : > { %1365 = vst.msk [vmem:[%s2616_s18 + $0x50] sm:$0xff] %vm368_vm0, %v1348_v63  ;;  %v1349_v2 = vadd.f32 %v1333_v41, %v713_v62  ;;  %v1634_v6 = vadd.f32 %v1633_v1, %v1632_v0  ;;  %v1635_v3 = vpop.f32.mrb[58].mxu1 }
 0x46f   : > { %v1636_v21 = vpop.f32.mrb[59].mxu1 }
 0x470   : > { %1366 = vst.msk [vmem:[%s2616_s18 + $0x58] sm:$0xff] %vm368_vm0, %v1349_v2  ;;  %v1316_v44 = vmul.f32 %v1895_v43, %v1634_v6  ;;  %v1637_v5 = vadd.f32 %v1636_v21, %v1635_v3 }
 0x472   : > { %v1334_v14 = vmul.f32 %v2608_v36, %v1316_v44  ;;  %v1317_v13 = vmul.f32 %v1897_v22, %v1637_v5 }
 0x474   : > { %v1350_v7 = vadd.f32 %v1334_v14, %v714_v10  ;;  %v1335_v24 = vmul.f32 %v2608_v36, %v1317_v13  ;;  %v1638_v25 = vpop.f32.mrb[60].mxu1 }
 0x475   : > { %v1639_v20 = vpop.f32.mrb[61].mxu1 }
 0x476   : > { %1367 = vst.msk [vmem:[%s2616_s18 + $0x60] sm:$0xff] %vm368_vm0, %v1350_v7  ;;  %v1351_v8 = vadd.f32 %v1335_v24, %v715_v17  ;;  %v1640_v23 = vadd.f32 %v1639_v20, %v1638_v25  ;;  %v1641_v26 = vpop.f32.mrb[62].mxu1 }
 0x477   : > { %v1642_v33 = vpop.f32.mrb[63].mxu1 }
 0x478   : > { %1368 = vst.msk [vmem:[%s2616_s18 + $0x68] sm:$0xff] %vm368_vm0, %v1351_v8  ;;  %v1318_v11 = vmul.f32 %v1899_v30, %v1640_v23  ;;  %v1643_v27 = vadd.f32 %v1642_v33, %v1641_v26 }
 0x47a   : > { %v1336_v39 = vmul.f32 %v2608_v36, %v1318_v11  ;;  %v1319_v42 = vmul.f32 %v1901_v12, %v1643_v27 }
 0x47c   : > { %v1352_v46 = vadd.f32 %v1336_v39, %v716_v28  ;;  %v1337_v47 = vmul.f32 %v2608_v36, %v1319_v42 }
 0x47e   : > { %1369 = vst.msk [vmem:[%s2616_s18 + $0x70] sm:$0xff] %vm368_vm0, %v1352_v46  ;;  %v1353_v31 = vadd.f32 %v1337_v47, %v717_v45 }
 0x480   : > { %1370 = vst.msk [vmem:[%s2616_s18 + $0x78] sm:$0xff] %vm368_vm0, %v1353_v31 }
 0x481   : > { %1945 = shalt.err (!%p1942_p9)
}
 0x482   : > { %s1946_s7 = scalar_lea.hbm %s2680_s14, 2048  ;;  %s1950_s10 = scalar_lea.hbm %s2757_s6, 8192 }
 0x483   : > { %p1947_p3 = scmp.ne.s32.totalorder %s2680_s14, %s1946_s7  ;;  %p1951_p5 = scmp.lt.u32.totalorder %s2680_s14, %s2757_s6 }
 0x484   : > { %p1952_p8 = scmp.lt.u32.totalorder %s1950_s10, %s1946_s7  ;;  %p1954_p7 = scmp.lt.u32.totalorder %s1946_s7, %s2680_s14 }
 0x485   : > { %p1948_p11 = pnand %p1947_p3, %p2771_p12 }
 0x486   : > { %p1953_p10 = por %p1952_p8, %p1951_p5 }
 0x487   : > { %p1949_p13 = pneg %p1948_p11 }
 0x488   : > { %p1955_p2 = por %p1954_p7, %p1953_p10 }
 0x48a   : > { %p1956_p4 = pnand %p1955_p2, %p1949_p13 }
 0x48c   : > { %1959 = shalt.err (!%p1956_p4)
}
 0x48d   : > { %s2062_s12 = smov 128   ;;  %s2063_s15 = smov 8  }
 0x48e   : > { %1694 = dma.vmem_to_hbm [thread:$0]  (%p2771_p12), %s2682_s30, 2048, %s2680_s14, %s2690_s9, %s2062_s12, %s2062_s12, %s2063_s15  }
 0x48f PF: > { %p1705_p0 = scmp.ge.s32.totalorder %s2054_s8, 2  ;;  %s1403_s11 = sand.u32 1, %s2014_s23  }
 0x490   : > { %p2772_p1 = scmp.ne.s32.totalorder %s2768_s26, 0  ;;  %s1404_s17 = scalar_lea.sflag [#allocation7], %s1403_s11 }
 0x492   : > { %p1701_p6 = pnand %p1705_p0, %p2772_p1 }
 0x494   : > { %2009 = dma.done.wait (!%p1701_p6), %s1404_s17, 2048  }
 0x495   : > { %2011 = vsyncadd (!%p1701_p6), %s1404_s17, 4294965248  ;;  %s23_s8 = sadd.s32 1, %s2054_s8   ;;  %s2773_s30 = sld [smem:[#allocation11_spill]] }
 0x496   : > { %p20_p9 = scmp.ge.s32.totalorder %s23_s8, 6   ;;  %s2774_s20 = sld [smem:[#allocation12_spill]] }
 0x497   : > { %s2775_s7 = sld [smem:[#allocation13_spill]]  ;;  %s2776_s23 = smov %s2018_s24 }
 0x498   : > { %s2777_s24 = smov %s2022_s25  ;;  %s2778_s25 = smov %s2192_s22 }
 0x499   : > { %s2779_s26 = smov %s2030_s27  ;;  %s2780_s27 = smov %s2034_s28 }
 0x49a   : > { %s2781_s28 = smov %s2189_s21  ;;  %s2782_s29 = smov %s2046_s5 }
 0x49b   :  { %22 = sbr.rel (!%p20_p9) target bundleno = 11 (0xb), region = 95 }
 0x49c   : > { %s2783_s5 = smov %s2774_s20 }
 0x4a2   :  { %1409 = vsyncpa [#allocation6], 1 }
 0x4a3   :  { %1411 = vsyncpa [#allocation6 + $0x1], 1 }
 0x4a4   :  { %1412 = vsyncpa [#allocation7], 1 }
 0x4a5   :  { %1414 = vsyncpa [#allocation7 + $0x1], 1 }

</bundles_post_ra>
